<compile_context>
chip_gen: v5e
topology: v5e:2x2
jax: 0.10.0
libtpu: 0.0.40
codegen_flags: <defaults>
</compile_context>

<pallas_src>
import functools

import jax
import jax.numpy as jnp
from jax import lax
from jax.experimental import pallas as pl
from jax.experimental.pallas import tpu as pltpu


# ----------------------------------------------------------------------------
# Fused kernel: all ResPath stages for one batch element.
#   x_ref    : (H, W*C)            input image, (W, C) fused on the lane axis
#   w_ref    : (S, KPAD, W*C)      per-stage banded im2col weights (row-window)
#   b_ref    : (S, 1, W*C)         per-stage folded bias, tiled over W
#   out_ref  : (H, W*C)            output image
#   apad_ref : (H+2, (W+2)*C)      zero-padded activation scratch (VMEM)
# ----------------------------------------------------------------------------
def _respath_fused_kernel(x_ref, w_ref, b_ref, out_ref, apad_ref, *,
                          H, W, C, n_stages, k_pad):
    WC = W * C

    # Zero the padded buffer once per image; the border stays zero for every
    # stage and implements the SAME (padding=1) behaviour of the 3x3 convs.
    apad_ref[...] = jnp.zeros_like(apad_ref)
    apad_ref[1:1 + H, C:C + WC] = x_ref[...]

    # Hoisted zero filler so the dot's contraction dim is a 128 multiple.
    zfill = jnp.zeros((H, k_pad), jnp.float32) if k_pad > 0 else None

    act = x_ref[...]  # overwritten below (n_stages >= 1)
    for s in range(n_stages):
        # Row-window im2col: 3 row-shifted full-width windows of the padded
        # activation concatenated on the contraction axis (no lane realign).
        pieces = [apad_ref[dy:dy + H, :] for dy in range(3)]
        if zfill is not None:
            pieces.append(zfill)
        col = jnp.concatenate(pieces, axis=-1)                   # (H, KPAD)
        acc = jnp.dot(col, w_ref[s], preferred_element_type=jnp.float32)
        act = jnp.maximum(acc + b_ref[s], 0.0)                   # (H, W*C)
        if s + 1 < n_stages:
            apad_ref[1:1 + H, C:C + WC] = act                    # next stage in
    out_ref[...] = act.astype(out_ref.dtype)


def respath_forward(x, stage_params):
    """Full ResPath forward.  x: (N, H, W, Cin) NHWC -> (N, H, W, Cout)."""
    assert len(stage_params) >= 1
    N, H, W, Cin = x.shape
    Cout = stage_params[0][0].shape[-1]
    C = max(Cin, Cout)            # channel count used on the lane axis
    S = len(stage_params)
    WC = W * C
    PW = (W + 2) * C              # padded width on the lane axis
    K = 3 * PW                    # banded im2col contraction length
    KPAD = ((K + 127) // 128) * 128

    # Pack input: zero-pad channels to C, fuse (W, C) onto the lane axis.
    xp = jnp.pad(x, ((0, 0), (0, 0), (0, 0), (0, C - Cin))).reshape(N, H, WC)

    # Per stage: fold the 1x1 branch into the centre tap, pad channels to C,
    # then expand to the banded row-window weight (KPAD, W*C):
    #   wband[dy*PW + (w+dx)*C + i, w*C + o] = W3[dy, dx, i, o]
    sel = jnp.stack([jnp.eye(W + 2, W, k=-dx, dtype=jnp.float32)
                     for dx in range(3)])                       # (3, W+2, W)
    wband_list, bias_list = [], []
    for (w3, w1, b) in stage_params:
        ci, co = w3.shape[2], w3.shape[3]
        w3 = w3.at[1, 1].add(w1)                                # fold 1x1 branch
        w3 = jnp.pad(w3, ((0, 0), (0, 0), (0, C - ci), (0, C - co)))
        wb = jnp.einsum("xpw,yxio->ypiwo", sel, w3)             # (3,W+2,C,W,C)
        wb = wb.reshape(K, WC)
        wb = jnp.pad(wb, ((0, KPAD - K), (0, 0)))
        wband_list.append(wb)
        bias_list.append(jnp.tile(jnp.pad(b, (0, C - co)), W))
    wband = jnp.stack(wband_list)                 # (S, KPAD, W*C)
    bias = jnp.stack(bias_list)[:, None, :]       # (S, 1,    W*C)

    kernel = functools.partial(_respath_fused_kernel,
                               H=H, W=W, C=C, n_stages=S, k_pad=KPAD - K)
    out = pl.pallas_call(
        kernel,
        out_shape=jax.ShapeDtypeStruct((N, H, WC), jnp.float32),
        grid=(N,),
        in_specs=[
            pl.BlockSpec((None, H, WC), lambda n: (n, 0, 0)),
            pl.BlockSpec((S, KPAD, WC), lambda n: (0, 0, 0)),
            pl.BlockSpec((S, 1, WC), lambda n: (0, 0, 0)),
        ],
        out_specs=pl.BlockSpec((None, H, WC), lambda n: (n, 0, 0)),
        scratch_shapes=[pltpu.VMEM((H + 2, PW), jnp.float32)],
        compiler_params=pltpu.CompilerParams(
            dimension_semantics=("parallel",)),
    )(xp, wband, bias)

    return out.reshape(N, H, W, C)[..., :Cout]


# ----------------------------------------------------------------------------
# Parameter construction (deterministic, synthetic) + eval-mode BN folding.
# TODO(synk): training-mode BatchNorm (batch stats + running-stat updates) has
# no clean single-kernel equivalent here; eval-mode BN is folded into weights.
# ----------------------------------------------------------------------------
def _make_stage_params(key, c_in, c_out, eps=1e-5):
    ks = jax.random.split(key, 10)
    w3 = 0.1 * jax.random.normal(ks[0], (3, 3, c_in, c_out), jnp.float32)
    b3 = 0.05 * jax.random.normal(ks[1], (c_out,), jnp.float32)
    w1 = 0.1 * jax.random.normal(ks[2], (c_in, c_out), jnp.float32)
    b1 = 0.05 * jax.random.normal(ks[3], (c_out,), jnp.float32)
    g3 = 1.0 + 0.1 * jax.random.normal(ks[4], (c_out,), jnp.float32)
    be3 = 0.1 * jax.random.normal(ks[5], (c_out,), jnp.float32)
    m3 = 0.1 * jax.random.normal(ks[6], (c_out,), jnp.float32)
    v3 = 0.5 + jax.random.uniform(ks[7], (c_out,), jnp.float32)
    g1 = 1.0 + 0.1 * jax.random.normal(ks[8], (c_out,), jnp.float32)
    be1 = 0.1 * jax.random.normal(ks[9], (c_out,), jnp.float32)
    m1 = jnp.zeros((c_out,), jnp.float32)
    v1 = jnp.ones((c_out,), jnp.float32)

    # Fold BN into conv:  BN(conv(x)) = (g/sqrt(v+eps)) * conv(x) + folded_bias
    s3 = g3 / jnp.sqrt(v3 + eps)
    s1 = g1 / jnp.sqrt(v1 + eps)
    w3_eff = w3 * s3[None, None, None, :]
    w1_eff = w1 * s1[None, :]
    bias_eff = s3 * (b3 - m3) + be3 + s1 * (b1 - m1) + be1
    return w3_eff, w1_eff, bias_eff


# ----------------------------------------------------------------------------
# Plain-JAX reference (for correctness check).
# ----------------------------------------------------------------------------
def _ref_stage(x, w3, w1, bias):
    y1 = jnp.einsum("nhwc,cd->nhwd", x, w1)
    y3 = lax.conv_general_dilated(
        x, w3, window_strides=(1, 1), padding="SAME",
        dimension_numbers=("NHWC", "HWIO", "NHWC"))
    return jnp.maximum(y1 + y3 + bias.reshape(1, 1, 1, -1), 0.0)


def _ref_forward(x, stage_params):
    out = x
    for (w3, w1, b) in stage_params:
        out = _ref_stage(out, w3, w1, b)
    return out


if __name__ == "__main__":
    # Module config: in_channels=4, out_channels=8, respath_length=1
    # (respath_length=1 exercises all four stages of the PyTorch module).
    N, C_IN, C_OUT, H, W = 2, 4, 8, 16, 16
    RESPATH_LENGTH = 1

    key = jax.random.PRNGKey(0)
    k_x, k_p = jax.random.split(key)
    x = jax.random.normal(k_x, (N, H, W, C_IN), jnp.float32)  # NHWC

    # Stage 4 always; stages 3/2/1 depending on respath_length.
    stage_ids = [4]
    if RESPATH_LENGTH < 4:
        stage_ids.append(3)
    if RESPATH_LENGTH < 3:
        stage_ids.append(2)
    if RESPATH_LENGTH < 2:
        stage_ids.append(1)

    stage_params = []
    keys = jax.random.split(k_p, len(stage_ids))
    for i, sid in enumerate(stage_ids):
        c_in = C_IN if sid == 4 else C_OUT
        stage_params.append(_make_stage_params(keys[i], c_in, C_OUT))

    out = respath_forward(x, stage_params)
    out = jax.block_until_ready(out)

    ref = _ref_forward(x, stage_params)
    assert out.shape == (N, H, W, C_OUT)
    assert jnp.allclose(out, ref, atol=1e-4, rtol=1e-4), (
        float(jnp.max(jnp.abs(out - ref))))

    print("KERNEL_OK")
</pallas_src>

<mosaic_0001>
module attributes {stable_mosaic.version = 11 : i64} {
  func.func @_respath_fused_kernel(%arg0: i32, %arg1: memref<1x16x128xf32, #tpu.memory_space<vmem>>, %arg2: memref<4x512x128xf32, #tpu.memory_space<vmem>>, %arg3: memref<4x1x128xf32, #tpu.memory_space<vmem>>, %arg4: memref<1x16x128xf32, #tpu.memory_space<vmem>>, %arg5: memref<18x144xf32, #tpu.memory_space<vmem>>) attributes {dimension_semantics = [#tpu.dimension_semantics<parallel>], iteration_bounds = array<i64: 2>, scalar_prefetch = 0 : i64, scratch_operands = 1 : i64, tpu.core_type = #tpu.core_type<tc>, window_params = [{transform_indices = @transform_0, window_bounds = array<i64: 1, 16, 128>}, {pipeline_mode = #tpu.pipeline_mode<synchronous>, transform_indices = @transform_1, window_bounds = array<i64: 4, 512, 128>}, {pipeline_mode = #tpu.pipeline_mode<synchronous>, transform_indices = @transform_2, window_bounds = array<i64: 4, 1, 128>}, {transform_indices = @transform_3, window_bounds = array<i64: 1, 16, 128>}]} {
    %cst = arith.constant 0.000000e+00 : f32
    %0 = vector.broadcast %cst : f32 to vector<18x144xf32>
    %c0 = arith.constant 0 : index
    %c0_0 = arith.constant 0 : index
    %1 = vector.load %arg5[%c0, %c0_0] : memref<18x144xf32, #tpu.memory_space<vmem>>, vector<18x144xf32>
    tpu.vector_store %arg5[%c0, %c0_0], %0 {strides = array<i32>} : memref<18x144xf32, #tpu.memory_space<vmem>>, vector<18x144xf32>,
    %c0_1 = arith.constant 0 : index
    %c0_2 = arith.constant 0 : index
    %c0_3 = arith.constant 0 : index
    %2 = vector.load %arg1[%c0_1, %c0_2, %c0_3] : memref<1x16x128xf32, #tpu.memory_space<vmem>>, vector<1x16x128xf32>
    %3 = vector.shape_cast %2 : vector<1x16x128xf32> to vector<16x128xf32>
    %c1 = arith.constant 1 : index
    %c8 = arith.constant 8 : index
    %4 = vector.load %arg5[%c1, %c8] : memref<18x144xf32, #tpu.memory_space<vmem>>, vector<16x128xf32>
    tpu.vector_store %arg5[%c1, %c8], %3 {strides = array<i32>} : memref<18x144xf32, #tpu.memory_space<vmem>>, vector<16x128xf32>,
    %cst_4 = arith.constant 0.000000e+00 : f32
    %5 = vector.broadcast %cst_4 : f32 to vector<16x80xf32>
    %c0_5 = arith.constant 0 : index
    %c0_6 = arith.constant 0 : index
    %6 = vector.load %arg5[%c0_5, %c0_6] : memref<18x144xf32, #tpu.memory_space<vmem>>, vector<16x144xf32>
    %c1_7 = arith.constant 1 : index
    %c0_8 = arith.constant 0 : index
    %7 = vector.load %arg5[%c1_7, %c0_8] : memref<18x144xf32, #tpu.memory_space<vmem>>, vector<16x144xf32>
    %c2 = arith.constant 2 : index
    %c0_9 = arith.constant 0 : index
    %8 = vector.load %arg5[%c2, %c0_9] : memref<18x144xf32, #tpu.memory_space<vmem>>, vector<16x144xf32>
    %9 = tpu.concatenate %6, %7, %8, %5 in 1 : vector<16x144xf32>, vector<16x144xf32>, vector<16x144xf32>, vector<16x80xf32> -> vector<16x512xf32>
    %c0_10 = arith.constant 0 : index
    %c0_11 = arith.constant 0 : index
    %c0_12 = arith.constant 0 : index
    %10 = vector.load %arg2[%c0_10, %c0_11, %c0_12] : memref<4x512x128xf32, #tpu.memory_space<vmem>>, vector<1x512x128xf32>
    %11 = vector.shape_cast %10 : vector<1x512x128xf32> to vector<512x128xf32>
    %cst_13 = arith.constant dense<0.000000e+00> : vector<16x128xf32>
    %12 = tpu.matmul %9, %11, %cst_13 {dimension_numbers = #tpu.dot_dimension_numbers<[1], [0], [0], [1], [0, 0, 1, 1], [], []>} : vector<16x512xf32>, vector<512x128xf32>, vector<16x128xf32> -> vector<16x128xf32>
    %c0_14 = arith.constant 0 : index
    %c0_15 = arith.constant 0 : index
    %c0_16 = arith.constant 0 : index
    %13 = vector.load %arg3[%c0_14, %c0_15, %c0_16] : memref<4x1x128xf32, #tpu.memory_space<vmem>>, vector<1x1x128xf32>
    %14 = vector.shape_cast %13 : vector<1x1x128xf32> to vector<1x128xf32>
    %15 = vector.broadcast %14 : vector<1x128xf32> to vector<16x128xf32>
    %16 = arith.addf %12, %15 : vector<16x128xf32>
    %cst_17 = arith.constant 0.000000e+00 : f32
    %17 = vector.broadcast %cst_17 : f32 to vector<16x128xf32>
    %18 = arith.maximumf %16, %17 : vector<16x128xf32>
    %c1_18 = arith.constant 1 : index
    %c8_19 = arith.constant 8 : index
    %19 = vector.load %arg5[%c1_18, %c8_19] : memref<18x144xf32, #tpu.memory_space<vmem>>, vector<16x128xf32>
    tpu.vector_store %arg5[%c1_18, %c8_19], %18 {strides = array<i32>} : memref<18x144xf32, #tpu.memory_space<vmem>>, vector<16x128xf32>,
    %c0_20 = arith.constant 0 : index
    %c0_21 = arith.constant 0 : index
    %20 = vector.load %arg5[%c0_20, %c0_21] : memref<18x144xf32, #tpu.memory_space<vmem>>, vector<16x144xf32>
    %c1_22 = arith.constant 1 : index
    %c0_23 = arith.constant 0 : index
    %21 = vector.load %arg5[%c1_22, %c0_23] : memref<18x144xf32, #tpu.memory_space<vmem>>, vector<16x144xf32>
    %c2_24 = arith.constant 2 : index
    %c0_25 = arith.constant 0 : index
    %22 = vector.load %arg5[%c2_24, %c0_25] : memref<18x144xf32, #tpu.memory_space<vmem>>, vector<16x144xf32>
    %23 = tpu.concatenate %20, %21, %22, %5 in 1 : vector<16x144xf32>, vector<16x144xf32>, vector<16x144xf32>, vector<16x80xf32> -> vector<16x512xf32>
    %c1_26 = arith.constant 1 : index
    %c0_27 = arith.constant 0 : index
    %c0_28 = arith.constant 0 : index
    %24 = vector.load %arg2[%c1_26, %c0_27, %c0_28] : memref<4x512x128xf32, #tpu.memory_space<vmem>>, vector<1x512x128xf32>
    %25 = vector.shape_cast %24 : vector<1x512x128xf32> to vector<512x128xf32>
    %cst_29 = arith.constant dense<0.000000e+00> : vector<16x128xf32>
    %26 = tpu.matmul %23, %25, %cst_29 {dimension_numbers = #tpu.dot_dimension_numbers<[1], [0], [0], [1], [0, 0, 1, 1], [], []>} : vector<16x512xf32>, vector<512x128xf32>, vector<16x128xf32> -> vector<16x128xf32>
    %c1_30 = arith.constant 1 : index
    %c0_31 = arith.constant 0 : index
    %c0_32 = arith.constant 0 : index
    %27 = vector.load %arg3[%c1_30, %c0_31, %c0_32] : memref<4x1x128xf32, #tpu.memory_space<vmem>>, vector<1x1x128xf32>
    %28 = vector.shape_cast %27 : vector<1x1x128xf32> to vector<1x128xf32>
    %29 = vector.broadcast %28 : vector<1x128xf32> to vector<16x128xf32>
    %30 = arith.addf %26, %29 : vector<16x128xf32>
    %cst_33 = arith.constant 0.000000e+00 : f32
    %31 = vector.broadcast %cst_33 : f32 to vector<16x128xf32>
    %32 = arith.maximumf %30, %31 : vector<16x128xf32>
    %c1_34 = arith.constant 1 : index
    %c8_35 = arith.constant 8 : index
    %33 = vector.load %arg5[%c1_34, %c8_35] : memref<18x144xf32, #tpu.memory_space<vmem>>, vector<16x128xf32>
    tpu.vector_store %arg5[%c1_34, %c8_35], %32 {strides = array<i32>} : memref<18x144xf32, #tpu.memory_space<vmem>>, vector<16x128xf32>,
    %c0_36 = arith.constant 0 : index
    %c0_37 = arith.constant 0 : index
    %34 = vector.load %arg5[%c0_36, %c0_37] : memref<18x144xf32, #tpu.memory_space<vmem>>, vector<16x144xf32>
    %c1_38 = arith.constant 1 : index
    %c0_39 = arith.constant 0 : index
    %35 = vector.load %arg5[%c1_38, %c0_39] : memref<18x144xf32, #tpu.memory_space<vmem>>, vector<16x144xf32>
    %c2_40 = arith.constant 2 : index
    %c0_41 = arith.constant 0 : index
    %36 = vector.load %arg5[%c2_40, %c0_41] : memref<18x144xf32, #tpu.memory_space<vmem>>, vector<16x144xf32>
    %37 = tpu.concatenate %34, %35, %36, %5 in 1 : vector<16x144xf32>, vector<16x144xf32>, vector<16x144xf32>, vector<16x80xf32> -> vector<16x512xf32>
    %c2_42 = arith.constant 2 : index
    %c0_43 = arith.constant 0 : index
    %c0_44 = arith.constant 0 : index
    %38 = vector.load %arg2[%c2_42, %c0_43, %c0_44] : memref<4x512x128xf32, #tpu.memory_space<vmem>>, vector<1x512x128xf32>
    %39 = vector.shape_cast %38 : vector<1x512x128xf32> to vector<512x128xf32>
    %cst_45 = arith.constant dense<0.000000e+00> : vector<16x128xf32>
    %40 = tpu.matmul %37, %39, %cst_45 {dimension_numbers = #tpu.dot_dimension_numbers<[1], [0], [0], [1], [0, 0, 1, 1], [], []>} : vector<16x512xf32>, vector<512x128xf32>, vector<16x128xf32> -> vector<16x128xf32>
    %c2_46 = arith.constant 2 : index
    %c0_47 = arith.constant 0 : index
    %c0_48 = arith.constant 0 : index
    %41 = vector.load %arg3[%c2_46, %c0_47, %c0_48] : memref<4x1x128xf32, #tpu.memory_space<vmem>>, vector<1x1x128xf32>
    %42 = vector.shape_cast %41 : vector<1x1x128xf32> to vector<1x128xf32>
    %43 = vector.broadcast %42 : vector<1x128xf32> to vector<16x128xf32>
    %44 = arith.addf %40, %43 : vector<16x128xf32>
    %cst_49 = arith.constant 0.000000e+00 : f32
    %45 = vector.broadcast %cst_49 : f32 to vector<16x128xf32>
    %46 = arith.maximumf %44, %45 : vector<16x128xf32>
    %c1_50 = arith.constant 1 : index
    %c8_51 = arith.constant 8 : index
    %47 = vector.load %arg5[%c1_50, %c8_51] : memref<18x144xf32, #tpu.memory_space<vmem>>, vector<16x128xf32>
    tpu.vector_store %arg5[%c1_50, %c8_51], %46 {strides = array<i32>} : memref<18x144xf32, #tpu.memory_space<vmem>>, vector<16x128xf32>,
    %c0_52 = arith.constant 0 : index
    %c0_53 = arith.constant 0 : index
    %48 = vector.load %arg5[%c0_52, %c0_53] : memref<18x144xf32, #tpu.memory_space<vmem>>, vector<16x144xf32>
    %c1_54 = arith.constant 1 : index
    %c0_55 = arith.constant 0 : index
    %49 = vector.load %arg5[%c1_54, %c0_55] : memref<18x144xf32, #tpu.memory_space<vmem>>, vector<16x144xf32>
    %c2_56 = arith.constant 2 : index
    %c0_57 = arith.constant 0 : index
    %50 = vector.load %arg5[%c2_56, %c0_57] : memref<18x144xf32, #tpu.memory_space<vmem>>, vector<16x144xf32>
    %51 = tpu.concatenate %48, %49, %50, %5 in 1 : vector<16x144xf32>, vector<16x144xf32>, vector<16x144xf32>, vector<16x80xf32> -> vector<16x512xf32>
    %c3 = arith.constant 3 : index
    %c0_58 = arith.constant 0 : index
    %c0_59 = arith.constant 0 : index
    %52 = vector.load %arg2[%c3, %c0_58, %c0_59] : memref<4x512x128xf32, #tpu.memory_space<vmem>>, vector<1x512x128xf32>
    %53 = vector.shape_cast %52 : vector<1x512x128xf32> to vector<512x128xf32>
    %cst_60 = arith.constant dense<0.000000e+00> : vector<16x128xf32>
    %54 = tpu.matmul %51, %53, %cst_60 {dimension_numbers = #tpu.dot_dimension_numbers<[1], [0], [0], [1], [0, 0, 1, 1], [], []>} : vector<16x512xf32>, vector<512x128xf32>, vector<16x128xf32> -> vector<16x128xf32>
    %c3_61 = arith.constant 3 : index
    %c0_62 = arith.constant 0 : index
    %c0_63 = arith.constant 0 : index
    %55 = vector.load %arg3[%c3_61, %c0_62, %c0_63] : memref<4x1x128xf32, #tpu.memory_space<vmem>>, vector<1x1x128xf32>
    %56 = vector.shape_cast %55 : vector<1x1x128xf32> to vector<1x128xf32>
    %57 = vector.broadcast %56 : vector<1x128xf32> to vector<16x128xf32>
    %58 = arith.addf %54, %57 : vector<16x128xf32>
    %cst_64 = arith.constant 0.000000e+00 : f32
    %59 = vector.broadcast %cst_64 : f32 to vector<16x128xf32>
    %60 = arith.maximumf %58, %59 : vector<16x128xf32>
    %c0_65 = arith.constant 0 : index
    %c0_66 = arith.constant 0 : index
    %c0_67 = arith.constant 0 : index
    %61 = vector.load %arg4[%c0_65, %c0_66, %c0_67] : memref<1x16x128xf32, #tpu.memory_space<vmem>>, vector<1x16x128xf32>
    %62 = vector.shape_cast %61 : vector<1x16x128xf32> to vector<16x128xf32>
    %63 = vector.shape_cast %60 : vector<16x128xf32> to vector<1x16x128xf32>
    tpu.vector_store %arg4[%c0_65, %c0_66, %c0_67], %63 {strides = array<i32>} : memref<1x16x128xf32, #tpu.memory_space<vmem>>, vector<1x16x128xf32>,
    return
  }
  func.func @transform_0(%arg0: i32) -> (i32, i32, i32) {
    %c0_i32 = arith.constant 0 : i32
    %c0_i32_0 = arith.constant 0 : i32
    %c0_i32_1 = arith.constant 0 : i32
    return %arg0, %c0_i32, %c0_i32_0 : i32, i32, i32
  }
  func.func @transform_1(%arg0: i32) -> (i32, i32, i32) {
    %c0_i32 = arith.constant 0 : i32
    %c0_i32_0 = arith.constant 0 : i32
    %c0_i32_1 = arith.constant 0 : i32
    %c0_i32_2 = arith.constant 0 : i32
    return %c0_i32, %c0_i32_0, %c0_i32_1 : i32, i32, i32
  }
  func.func @transform_2(%arg0: i32) -> (i32, i32, i32) {
    %c0_i32 = arith.constant 0 : i32
    %c0_i32_0 = arith.constant 0 : i32
    %c0_i32_1 = arith.constant 0 : i32
    %c0_i32_2 = arith.constant 0 : i32
    return %c0_i32, %c0_i32_0, %c0_i32_1 : i32, i32, i32
  }
  func.func @transform_3(%arg0: i32) -> (i32, i32, i32) {
    %c0_i32 = arith.constant 0 : i32
    %c0_i32_0 = arith.constant 0 : i32
    %c0_i32_1 = arith.constant 0 : i32
    return %arg0, %c0_i32, %c0_i32_0 : i32, i32, i32
  }
}

</mosaic_0001>

<bundles_post_ra>
// kernel: tpu_custom_call.1
= control target key start
LH: loop header
LB: loop body
LE: loop exit
PB: predicated region body
PF: predicated region fallthrough
CT: control target
= control target key end

     0   :  { %8 = vsyncpa [#allocation4], 0  ;;  %s2044_s0 = inlined_call_operand.hbm [shape: f32[2,16,128], index: 0, kind: input, shape index: {}]   ;;  %s2045_s1 = inlined_call_operand.hbm [shape: f32[4,512,128], index: 1, kind: input, shape index: {}]   ;;  %s2046_s2 = inlined_call_operand.hbm [shape: f32[4,1,128], index: 2, kind: input, shape index: {}]   ;;  %s2047_s3 = inlined_call_operand.hbm [shape: f32[2,16,128], index: 3, kind: output, shape index: {}]  }
   0x1   :  { %10 = vsyncpa [#allocation4 + $0x1], 0 }
   0x2   :  { %11 = vsyncpa [#allocation7], 0 }
   0x3   :  { %12 = vsyncpa [#allocation5], 0 }
   0x4   :  { %14 = vsyncpa [#allocation5 + $0x1], 0  ;;  %s1734_s12 = smov 0   ;;  %s1736_s13 = smov 0  }
   0x5   :  { %s1738_s14 = smov 0   ;;  %s1740_s15 = smov 0  }
   0x6 LB: > { %s1755_s16 = sadd.s32 4294967295, %s1701_s15   ;;  %s1393_s17 = sadd.s32 4294967294, %s1701_s15   ;;  %s1701_s15 = sphi %s1740_s15, %s2057_s15   ;;  %s1697_s14 = sphi %s1738_s14, %s2056_s14   ;;  %s1693_s13 = sphi %s1736_s13, %s2055_s13   ;;  %s1689_s12 = sphi %s1734_s12, %s2054_s12  }
   0x7   : > { %p40_p0 = scmp.ne.s32.totalorder %s1693_s13, %s1689_s12  ;;  %p41_p1 = scmp.eq.s32.totalorder %s1755_s16, 0 }
   0x8   : > { %p106_p2 = scmp.eq.s32.totalorder %s1755_s16, 1  ;;  %p112_p3 = scmp.eq.s32.totalorder %s1393_s17, 1 }
   0x9   : > { %p1764_p4 = por %p41_p1, %p40_p0  ;;  %p1394_p5 = scmp.ge.s32.totalorder %s1701_s15, 1 }
   0xa   : > { %p1769_p6 = por %p112_p3, %p40_p0  ;;  %p119_p7 = scmp.lt.s32.totalorder %s1701_s15, 3 }
   0xb   : > { %s130_s22 = sshll.u32 %s2045_s1, 4  ;;  %s1703_s24 = smov [#allocation6]   ;;  %s131_s22 = int_to_ptr.hbm [resolvable:$true] %s130_s22 }
   0xc   : > { %p1777_p8 = pnand %p1394_p5, %p119_p7  ;;  %s132_s25 = sshll.u32 %s1703_s24, 4  ;;  %s133_s25 = int_to_ptr.vmem [resolvable:$true] %s132_s25 }
   0xd   : > { %s144_s28 = sshll.u32 %s2046_s2, 4  ;;  %s1704_s29 = smov 128   ;;  %s145_s28 = int_to_ptr.hbm [resolvable:$true] %s144_s28 }
   0xe   : > { %p1433_p9 = pneg %p1777_p8  ;;  %s1705_s30 = smov 8  }
   0xf   : > { %s1706_s4 = smov [#allocation8]   ;;  %s1707_s6 = smov 16  }
  0x10   : > { %p1434_p10 = pnand %p1433_p9, %p41_p1  ;;  %s146_s5 = sshll.u32 %s1706_s4, 4  ;;  %s147_s5 = int_to_ptr.vmem [resolvable:$true] %s146_s5 }
  0x11   : > { %s1708_s7 = smov 1   ;;  %s1793_s8 = sadd.s32 1, %s1701_s15  }
  0x12   : > { %1436 = dma.hbm_to_vmem [thread:$0]  (!%p1434_p10), %s131_s22, 32768, %s133_s25, [#allocation7], %s1704_s29, %s1704_s29, %s1705_s30  }
  0x13   : > { %1439 = dma.hbm_to_vmem [thread:$0]  (!%p1434_p10), %s145_s28, 64, %s147_s5, [#allocation7], %s1707_s6, %s1707_s6, %s1708_s7  }
  0x14   : > { %s24_s9 = ssub.s32 %s1701_s15, %s1793_s8  ;;  %s27_s10 = sadd.s32 1, %s1697_s14 }
  0x15   : > { %p25_p12 = scmp.eq.s32.totalorder %s24_s9, 0  ;;  %p34_p13 = scmp.ne.s32.totalorder %s1697_s14, %s1693_s13 }
  0x16   : > { %p35_p0 = scmp.eq.s32.totalorder %s1701_s15, 0  ;;  %p1450_p7 = scmp.lt.s32.totalorder %s1701_s15, 2 }
  0x17   : > { %s1802_s11 = scalar_select %p25_p12, %s1697_s14, %s27_s10  }
  0x18   : > { %p36_p3 = por %p35_p0, %p34_p13  ;;  %p1806_p5 = por %p106_p2, %p34_p13 }
  0x19   : > { %s160_s20 = sand.u32 1, %s1697_s14   ;;  %s1419_s22 = sshll.u32 %s1701_s15, 4 }
  0x1a   : > { %s1398_s21 = sshll.u32 %s160_s20, 4  ;;  %s169_s26 = scalar_lea.hbm %s2044_s0, %s1419_s22 }
  0x1b   : > { %s164_s27 = scalar_lea.vmem [#allocation3], %s1398_s21  ;;  %s170_s4 = sshll.u32 %s169_s26, 4  ;;  %s171_s4 = int_to_ptr.hbm [resolvable:$true] %s170_s4 }
  0x1c   : > { %s172_s28 = sshll.u32 %s164_s27, 4  ;;  %p1816_p9 = pnand %p1450_p7, %p36_p3  ;;  %s173_s28 = int_to_ptr.vmem [resolvable:$true] %s172_s28 }
  0x1d   : > { %s161_s6 = scalar_lea.sflag [#allocation4], %s160_s20  ;;  %s1601_s7 = sshra.s32 %s171_s4, 4  ;;  %s1602_s7 = int_to_ptr.hbm [resolvable:$true] %s1601_s7 }
  0x1e   : > { %s1603_s9 = scalar_lea.hbm %s1602_s7, 16  ;;  %p1605_p10 = pneg %p1816_p9 }
  0x1f   : > { %p1604_p2 = scmp.ne.s32.totalorder %s1602_s7, %s1603_s9  ;;  %s1608_s22 = scalar_lea.hbm %s2044_s0, 32 }
  0x20   : > { %p1609_p0 = scmp.lt.s32.totalorder %s1602_s7, %s2044_s0  ;;  %p1610_p3 = scmp.lt.s32.totalorder %s1608_s22, %s1603_s9 }
  0x21   : > { %p1606_p12 = pnand %p1605_p10, %p1604_p2 }
  0x22   : > { %p1611_p7 = por %p1610_p3, %p1609_p0 }
  0x23   : > { %p1607_p13 = pneg %p1606_p12 }
  0x25   : > { %p1612_p11 = pnand %p1611_p7, %p1607_p13 }
  0x27   : > { %1615 = shalt.err (!%p1612_p11)
}
  0x28   : > { %1443 = dma.hbm_to_vmem [thread:$0]  (!%p1816_p9), %s171_s4, 256, %s173_s28, %s161_s6, %s1704_s29, %s1704_s29, %s1705_s30  }
  0x29   : > { %184 = sbr.rel (%p1777_p8) target bundleno = 1649 (0x671), region = 32  ;;  %s1836_s20 = sand.u32 (!%p1777_p8), 1, %s1693_s13  }
  0x2a   : > { %s1402_s26 = sshll.u32 (!%p1777_p8), %s1836_s20, 4  ;;  %s187_s27 = scalar_lea.sflag (!%p1777_p8), [#allocation4], %s1836_s20 }
  0x2b   : > { %s190_s7 = scalar_lea.vmem (!%p1777_p8), [#allocation3], %s1402_s26 }
  0x2e   : > { %1676 = dma.done.wait (%p1764_p4), %s187_s27, 256  }
  0x2f   : > { %1678 = vsyncadd (%p1764_p4), %s187_s27, 4294967040 }
  0x30   : > { %1680 = dma.done.wait (%p41_p1), [#allocation7], 32832  }
  0x31   : > { %1682 = vsyncadd (%p41_p1), [#allocation7], 4294934464  ;;  %vm225_vm0 = vcmask 130048   ;;  %v1709_v0 = vmov 0.0   ;;  %v232_v1 = vld [vmem:[%s190_s7] sm:$0xff]  ;;  %v233_v2 = vld [vmem:[%s190_s7 + $0x8] sm:$0xff] }
  0x32   : > { %224 = vst [vmem:[#allocation2] sm:$0xff] %v1709_v0  ;;  %v356_v3 = vld [vmem:[#allocation6 + $0x78] sm:$0xff]  ;;  %v237_v4 = vrot.slane %v232_v1, 7  ;;  %v238_v5 = vrot.slane %v233_v2, 7  ;;  %v355_v6 = vld [vmem:[#allocation6 + $0x70] sm:$0xff]  ;;  %s1710_s18 = smov 8  }
  0x33   : > { %226 = vst.msk [vmem:[#allocation2 + $0x8] sm:$0xff] %vm225_vm0, %v1709_v0  ;;  %409 = vmatpush.msra.mxu0 %v356_v3  ;;  %v354_v7 = vld [vmem:[#allocation6 + $0x68] sm:$0xff]  ;;  %vm236_vm1 = vcmask 1040384   ;;  %v353_v8 = vld [vmem:[#allocation6 + $0x60] sm:$0xff]  ;;  %v352_v9 = vld [vmem:[#allocation6 + $0x58] sm:$0xff]  ;;  %vm230_vm2 = vcmask 123904  }
  0x34   : > { %227 = vst [vmem:[#allocation2 + $0x10] sm:$0xff] %v1709_v0  ;;  %240 = vrot.lane.b32.xlu0 %v237_v4, %s1710_s18  ;;  %244 = vrot.lane.b32.xlu1 %v238_v5, %s1710_s18  ;;  %v239_v10 = vsel %vm236_vm1, %v237_v4, %v238_v5  ;;  %v351_v11 = vld [vmem:[#allocation6 + $0x50] sm:$0xff]  ;;  %v350_v12 = vld [vmem:[#allocation6 + $0x48] sm:$0xff]  ;;  %v349_v13 = vld [vmem:[#allocation6 + $0x40] sm:$0xff]  ;;  %vm249_vm3 = vcmask 1047617   ;;  %vm251_vm4 = vcmask 64513  }
  0x35   : > { %228 = vst.msk [vmem:[#allocation2 + $0x18] sm:$0xff] %vm225_vm0, %v1709_v0  ;;  %410 = vmatpush.msra.mxu0 %v355_v6  ;;  %v348_v14 = vld [vmem:[#allocation6 + $0x38] sm:$0xff]  ;;  %v347_v15 = vld [vmem:[#allocation6 + $0x30] sm:$0xff]  ;;  %v346_v16 = vld [vmem:[#allocation6 + $0x28] sm:$0xff]  ;;  %vm257_vm5 = vcmask 1040448   ;;  %vm259_vm6 = vcmask 57344  }
  0x36   : > { %229 = vst [vmem:[#allocation2 + $0x20] sm:$0x3] %v1709_v0  ;;  %v345_v17 = vld [vmem:[#allocation6 + $0x20] sm:$0xff]  ;;  %v344_v18 = vld [vmem:[#allocation6 + $0x18] sm:$0xff]  ;;  %v343_v19 = vld [vmem:[#allocation6 + $0x10] sm:$0xff]  ;;  %vm253_vm7 = vcmask 1047616  }
  0x37   : > { %411 = vmatpush.msra.mxu0 %v354_v7  ;;  %231 = vst.msk [vmem:[#allocation2 + $0x28] sm:$0x3] %vm230_vm2, %v1709_v0  ;;  %v342_v20 = vld [vmem:[#allocation6 + $0x8] sm:$0xff]  ;;  %v341_v21 = vld [vmem:[#allocation6] sm:$0xff]  ;;  %v404_v24 = vld [vmem:[#allocation6 + $0x1f8] sm:$0xff]  ;;  %vm255_vm8 = vcmask 64512  }
  0x38   : > { %v403_v25 = vld [vmem:[#allocation6 + $0x1f0] sm:$0xff]  ;;  %478 = vmatpush.msra.mxu3 %v404_v24  ;;  %v402_v26 = vld [vmem:[#allocation6 + $0x1e8] sm:$0xff]  ;;  %v372_v27 = vld [vmem:[#allocation6 + $0xf8] sm:$0xff]  ;;  %vm308_vm9 = vcmask 1045504   ;;  %vm279_vm10 = vcmask 1046528   ;;  %s1711_s23 = smov 32  }
  0x39   : > { %412 = vmatpush.msra.mxu0 %v353_v8  ;;  %v401_v30 = vld [vmem:[#allocation6 + $0x1e0] sm:$0xff]  ;;  %432 = vmatpush.msra.mxu1 %v372_v27  ;;  %v388_v31 = vld [vmem:[#allocation6 + $0x178] sm:$0xff]  ;;  %v399_v34 = vld [vmem:[#allocation6 + $0x1d0] sm:$0xff]  ;;  %s1712_s29 = smov 16   ;;  %vm327_vm11 = vcmask 261120   ;;  %vm338_vm12 = vcmask 392192  }
  0x3a   : > { %479 = vmatpush.msra.mxu3 %v403_v25  ;;  %v400_v32 = vld [vmem:[#allocation6 + $0x1d8] sm:$0xff]  ;;  %455 = vmatpush.msra.mxu2 %v388_v31  ;;  %v398_v38 = vld [vmem:[#allocation6 + $0x1c8] sm:$0xff]  ;;  %v397_v43 = vld [vmem:[#allocation6 + $0x1c0] sm:$0xff]  ;;  %s1420_s30 = sshll.u32 %s1755_s16, 4  ;;  %s223_s28 = scalar_lea.vmem [#allocation9], %s1402_s26 }
  0x3b   : > { %413 = vmatpush.msra.mxu0 %v352_v9  ;;  %v396_v51 = vld [vmem:[#allocation6 + $0x1b8] sm:$0xff]  ;;  %v395_v59 = vld [vmem:[#allocation6 + $0x1b0] sm:$0xff]  ;;  %v394_v63 = vld [vmem:[#allocation6 + $0x1a8] sm:$0xff]  ;;  %s1297_s6 = scalar_lea.hbm %s2047_s3, %s1420_s30  ;;  %s1298_s9 = sshll.u32 %s223_s28, 4  ;;  %s1299_s9 = int_to_ptr.vmem [resolvable:$true] %s1298_s9 }
  0x3c   : > { %242 = vrot.lane.b32.xlu0 %v239_v10, %s1710_s18  ;;  %480 = vmatpush.msra.mxu3 %v402_v26  ;;  %v371_v7 = vld [vmem:[#allocation6 + $0xf0] sm:$0xff]  ;;  %v393_v8 = vld [vmem:[#allocation6 + $0x1a0] sm:$0xff]  ;;  %v370_v10 = vld [vmem:[#allocation6 + $0xe8] sm:$0xff]  ;;  %s1300_s10 = sshll.u32 %s1297_s6, 4  ;;  %s1286_s16 = scalar_lea.sflag [#allocation5], %s1836_s20  ;;  %s1301_s10 = int_to_ptr.hbm [resolvable:$true] %s1300_s10 }
  0x3d   : > { %414 = vmatpush.msra.mxu0 %v351_v11  ;;  %v387_v9 = vld [vmem:[#allocation6 + $0x170] sm:$0xff]  ;;  %433 = vmatpush.msra.mxu1 %v371_v7  ;;  %v392_v11 = vld [vmem:[#allocation6 + $0x198] sm:$0xff]  ;;  %v365_v24 = vld [vmem:[#allocation6 + $0xc0] sm:$0xff]  ;;  %s1645_s21 = sshra.s32 %s1301_s10, 4  ;;  %s1651_s26 = scalar_lea.hbm %s2047_s3, 32  ;;  %s1646_s21 = int_to_ptr.hbm [resolvable:$true] %s1645_s21 }
  0x3e   : > { %481 = vmatpush.msra.mxu3 %v401_v30  ;;  %456 = vmatpush.msra.mxu2 %v387_v9  ;;  %v381_v25 = vld [vmem:[#allocation6 + $0x140] sm:$0xff]  ;;  %v364_v26 = vld [vmem:[#allocation6 + $0xb8] sm:$0xff]  ;;  %v362_v30 = vld [vmem:[#allocation6 + $0xa8] sm:$0xff]  ;;  %s1647_s22 = scalar_lea.hbm %s1646_s21, 16  ;;  %p1652_p11 = scmp.lt.s32.totalorder %s1646_s21, %s2047_s3 }
  0x3f   : > { %415 = vmatpush.msra.mxu0 %v350_v12  ;;  %v386_v12 = vld [vmem:[#allocation6 + $0x168] sm:$0xff]  ;;  %434 = vmatpush.msra.mxu1 %v370_v10  ;;  %v380_v27 = vld [vmem:[#allocation6 + $0x138] sm:$0xff]  ;;  %p1648_p1 = scmp.ne.s32.totalorder %s1646_s21, %s1647_s22  ;;  %p1653_p9 = scmp.lt.s32.totalorder %s1651_s26, %s1647_s22 }
  0x40   : > { %482 = vmatpush.msra.mxu3 %v400_v32  ;;  %457 = vmatpush.msra.mxu2 %v386_v12  ;;  %v378_v31 = vld [vmem:[#allocation6 + $0x128] sm:$0xff]  ;;  %v361_v32 = vld [vmem:[#allocation6 + $0xa0] sm:$0xff] }
  0x41   : > { %416 = vmatpush.msra.mxu0 %v349_v13  ;;  %v369_v13 = vld [vmem:[#allocation6 + $0xe0] sm:$0xff]  ;;  %p1649_p4 = pnand %p1648_p1, %p1806_p5  ;;  %p1654_p2 = por %p1653_p9, %p1652_p11 }
  0x42   : > { %483 = vmatpush.msra.mxu3 %v399_v34  ;;  %435 = vmatpush.msra.mxu1 %v369_v13  ;;  %v360_v34 = vld [vmem:[#allocation6 + $0x98] sm:$0xff] }
  0x43   : > { %417 = vmatpush.msra.mxu0 %v348_v14  ;;  %v391_v14 = vld [vmem:[#allocation6 + $0x190] sm:$0xff]  ;;  %p1650_p8 = pneg %p1649_p4 }
  0x44   : > { %484 = vmatpush.msra.mxu3 %v398_v38  ;;  %v358_v38 = vld [vmem:[#allocation6 + $0x88] sm:$0xff] }
  0x45   : > { %418 = vmatpush.msra.mxu0 %v347_v15  ;;  %v385_v15 = vld [vmem:[#allocation6 + $0x160] sm:$0xff]  ;;  %p1655_p10 = pnand %p1654_p2, %p1650_p8 }
  0x46   : > { %485 = vmatpush.msra.mxu3 %v397_v43  ;;  %458 = vmatpush.msra.mxu2 %v385_v15 }
  0x47   : > { %419 = vmatpush.msra.mxu0 %v346_v16  ;;  %v368_v16 = vld [vmem:[#allocation6 + $0xd8] sm:$0xff] }
  0x48   : > { %486 = vmatpush.msra.mxu3 %v396_v51  ;;  %436 = vmatpush.msra.mxu1 %v368_v16 }
  0x49   : > { %420 = vmatpush.msra.mxu0 %v345_v17  ;;  %v390_v17 = vld [vmem:[#allocation6 + $0x188] sm:$0xff] }
  0x4a   : > { %487 = vmatpush.msra.mxu3 %v395_v59 }
  0x4b   : > { %421 = vmatpush.msra.mxu0 %v344_v18  ;;  %v384_v18 = vld [vmem:[#allocation6 + $0x158] sm:$0xff] }
  0x4c   : > { %488 = vmatpush.msra.mxu3 %v394_v63  ;;  %459 = vmatpush.msra.mxu2 %v384_v18  ;;  %v614_v63 = vld [vmem:[#allocation6 + $0x270] sm:$0xff] }
  0x4d   : > { %422 = vmatpush.msra.mxu0 %v343_v19  ;;  %v367_v19 = vld [vmem:[#allocation6 + $0xd0] sm:$0xff] }
  0x4e   : > { %489 = vmatpush.msra.mxu3 %v393_v8  ;;  %437 = vmatpush.msra.mxu1 %v367_v19 }
  0x4f   : > { %423 = vmatpush.msra.mxu0 %v342_v20  ;;  %v389_v20 = vld [vmem:[#allocation6 + $0x180] sm:$0xff] }
  0x50   : > { %490 = vmatpush.msra.mxu3 %v392_v11 }
  0x51   : > { %424 = vmatpush.msra.mxu0 %v341_v21  ;;  %v383_v21 = vld [vmem:[#allocation6 + $0x150] sm:$0xff] }
  0x52   : > { %491 = vmatpush.msra.mxu3 %v391_v14  ;;  %460 = vmatpush.msra.mxu2 %v383_v21 }
  0x54   : > { %492 = vmatpush.msra.mxu3 %v390_v17 }
  0x56   : > { %493 = vmatpush.msra.mxu3 %v389_v20 }
  0xa6   : > { %v241_v22 = vpop.permute.xlu0 %240  ;;  %v245_v23 = vpop.permute.xlu1 %244 }
  0xa7   : > { %250 = vst.msk [vmem:[#allocation2] sm:$0xfe] %vm249_vm3, %v241_v22 }
  0xa8   : > { %252 = vst.msk [vmem:[#allocation2 + $0x8] sm:$0xfe] %vm251_vm4, %v241_v22  ;;  %v366_v22 = vld [vmem:[#allocation6 + $0xc8] sm:$0xff] }
  0xa9   : > { %258 = vst.msk [vmem:[#allocation2 + $0x20] sm:$0x1] %vm257_vm5, %v245_v23  ;;  %438 = vmatpush.msra.mxu1 %v366_v22 }
  0xaa   : > { %260 = vst.msk [vmem:[#allocation2 + $0x28] sm:$0x1] %vm259_vm6, %v245_v23  ;;  %v382_v23 = vld [vmem:[#allocation6 + $0x148] sm:$0xff] }
  0xab   : > { %461 = vmatpush.msra.mxu2 %v382_v23  ;;  %439 = vmatpush.msra.mxu1 %v365_v24  ;;  %v611_v23 = vld [vmem:[#allocation6 + $0x258] sm:$0xff]  ;;  %v610_v24 = vld [vmem:[#allocation6 + $0x250] sm:$0xff] }
  0xad   : > { %462 = vmatpush.msra.mxu2 %v381_v25  ;;  %440 = vmatpush.msra.mxu1 %v364_v26  ;;  %v609_v25 = vld [vmem:[#allocation6 + $0x248] sm:$0xff]  ;;  %v608_v26 = vld [vmem:[#allocation6 + $0x240] sm:$0xff] }
  0xae   : > { %v243_v28 = vpop.permute.xlu0 %242  ;;  %v261_v29 = vld [vmem:[#allocation2] sm:$0xff] }
  0xaf   : > { %254 = vst.msk [vmem:[#allocation2 + $0x10] sm:$0xff] %vm253_vm7, %v243_v28  ;;  %425 = vmatmul.f32.vlgmr.msra.gmra.mxu0 %v261_v29  ;;  %v269_v36 = vld [vmem:[#allocation2] sm:$0xfc]  ;;  %v266_v40 = vld [vmem:[#allocation2 + $0x8] sm:$0xfe]  ;;  %463 = vmatpush.msra.mxu2 %v380_v27 }
  0xb0   : > { %256 = vst.msk [vmem:[#allocation2 + $0x18] sm:$0xff] %vm255_vm8, %v243_v28  ;;  %v267_v33 = vld [vmem:[#allocation2 + $0x20] sm:$0x1]  ;;  %v265_v37 = vld [vmem:[#allocation2] sm:$0xfe]  ;;  %v309_v45 = vrot.slane %v269_v36, 2 }
  0xb1   : > { %v268_v35 = vld [vmem:[#allocation2 + $0x28] sm:$0x1]  ;;  %v286_v39 = vrot.slane %v267_v33, 1  ;;  %v280_v48 = vrot.slane %v265_v37, 1  ;;  %v283_v50 = vrot.slane %v266_v40, 1  ;;  %v363_v28 = vld [vmem:[#allocation6 + $0xb0] sm:$0xff] }
  0xb2   : > { %v288_v42 = vrot.slane %v268_v35, 1  ;;  %v270_v60 = vld [vmem:[#allocation2 + $0x8] sm:$0xfc]  ;;  %v271_v62 = vld [vmem:[#allocation2 + $0x20] sm:$0x3]  ;;  %441 = vmatpush.msra.mxu1 %v363_v28  ;;  %v377_v33 = vld [vmem:[#allocation6 + $0x120] sm:$0xff] }
  0xb3   : > { %v312_v0 = vrot.slane %v270_v60, 2  ;;  %v315_v1 = vrot.slane %v271_v62, 2  ;;  %v272_v3 = vld [vmem:[#allocation2 + $0x28] sm:$0x3]  ;;  %v379_v29 = vld [vmem:[#allocation6 + $0x130] sm:$0xff]  ;;  %v357_v40 = vld [vmem:[#allocation6 + $0x80] sm:$0xff] }
  0xb4   : > { %v317_v5 = vrot.slane %v272_v3, 2  ;;  %464 = vmatpush.msra.mxu2 %v379_v29  ;;  %442 = vmatpush.msra.mxu1 %v362_v30  ;;  %v376_v35 = vld [vmem:[#allocation6 + $0x118] sm:$0xff]  ;;  %v359_v36 = vld [vmem:[#allocation6 + $0x90] sm:$0xff]  ;;  %v1537_v3 = vld [vmem:[#allocation8] ss:$0 sm:$0xff] }
  0xb5   : > { %v375_v37 = vld [vmem:[#allocation6 + $0x110] sm:$0xff]  ;;  %v615_v62 = vld [vmem:[#allocation6 + $0x278] sm:$0xff]  ;;  %v605_v29 = vld [vmem:[#allocation6 + $0x228] sm:$0xff] }
  0xb6   : > { %v263_v41 = vld [vmem:[#allocation2 + $0x10] sm:$0xff]  ;;  %465 = vmatpush.msra.mxu2 %v378_v31  ;;  %443 = vmatpush.msra.mxu1 %v361_v32  ;;  %v607_v27 = vld [vmem:[#allocation6 + $0x238] sm:$0xff]  ;;  %v606_v28 = vld [vmem:[#allocation6 + $0x230] sm:$0xff] }
  0xb7   : > { %v281_v44 = vrot.slane %v263_v41, 1  ;;  %428 = vmatmul.f32.gmra.mxu0 %v263_v41  ;;  %v310_v46 = vrot.slane %v263_v41, 2  ;;  %v1862_v47 = vld [vmem:[#allocation2 + $0x18] sm:$0xff]  ;;  %v373_v41 = vld [vmem:[#allocation6 + $0x100] sm:$0xff]  ;;  %v603_v31 = vld [vmem:[#allocation6 + $0x218] sm:$0xff] }
  0xb8   : > { %v284_v49 = vrot.slane %v1862_v47, 1  ;;  %v313_v61 = vrot.slane %v1862_v47, 2  ;;  %466 = vmatpush.msra.mxu2 %v377_v33  ;;  %444 = vmatpush.msra.mxu1 %v360_v34  ;;  %v604_v30 = vld [vmem:[#allocation6 + $0x220] sm:$0xff]  ;;  %v602_v32 = vld [vmem:[#allocation6 + $0x210] sm:$0xff]  ;;  %v601_v33 = vld [vmem:[#allocation6 + $0x208] sm:$0xff] }
  0xb9   : > { %v311_v52 = vsel %vm308_vm9, %v309_v45, %v310_v46  ;;  %v287_v53 = vsel %vm279_vm10, %v281_v44, %v286_v39  ;;  %v282_v54 = vsel %vm279_vm10, %v280_v48, %v281_v44  ;;  %v316_v4 = vsel %vm308_vm9, %v310_v46, %v315_v1  ;;  %v374_v39 = vld [vmem:[#allocation6 + $0x108] sm:$0xff]  ;;  %669 = vmatpush.msrb.mxu0 %v615_v62  ;;  %v612_v1 = vld [vmem:[#allocation6 + $0x260] sm:$0xff] }
  0xba   : > { %319 = vrot.lane.b32.xlu2 %v311_v52, %s1711_s23  ;;  %v289_v55 = vsel %vm279_vm10, %v284_v49, %v288_v42  ;;  %v285_v56 = vsel %vm279_vm10, %v283_v50, %v284_v49  ;;  %v314_v2 = vsel %vm308_vm9, %v312_v0, %v313_v61  ;;  %v318_v6 = vsel %vm308_vm9, %v313_v61, %v317_v5  ;;  %v262_v49 = vld [vmem:[#allocation2 + $0x8] sm:$0xff]  ;;  %v613_v0 = vld [vmem:[#allocation6 + $0x268] sm:$0xff]  ;;  %v600_v34 = vld [vmem:[#allocation6 + $0x200] sm:$0xff] }
  0xbb   : > { %v1502_v57 = vpack.i.bf16 %v289_v55, %v287_v53  ;;  %v1497_v58 = vpack.i.bf16 %v285_v56, %v282_v54  ;;  %467 = vmatpush.msra.mxu2 %v376_v35  ;;  %445 = vmatpush.msra.mxu1 %v359_v36 }
  0xbc   : > { %670 = vmatpush.msrb.mxu0 %v614_v63 }
  0xbd   : > { %1503 = vrot.lane.b32.xlu0 %v1502_v57, %s1712_s29  ;;  %1498 = vrot.lane.b32.xlu1 %v1497_v58, %s1712_s29 }
  0xbe   : > { %468 = vmatpush.msra.mxu2 %v375_v37  ;;  %446 = vmatpush.msra.mxu1 %v358_v38  ;;  %v663_v37 = vld [vmem:[#allocation6 + $0x3f8] sm:$0xff]  ;;  %v662_v38 = vld [vmem:[#allocation6 + $0x3f0] sm:$0xff] }
  0xbf   : > { %671 = vmatpush.msrb.mxu0 %v613_v0  ;;  %738 = vmatpush.msrb.mxu3 %v663_v37  ;;  %v652_v37 = vld [vmem:[#allocation6 + $0x3a0] sm:$0xff] }
  0xc0   : > { %469 = vmatpush.msra.mxu2 %v374_v39  ;;  %447 = vmatpush.msra.mxu1 %v357_v40  ;;  %v631_v39 = vld [vmem:[#allocation6 + $0x2f8] sm:$0xff] }
  0xc1   : > { %672 = vmatpush.msrb.mxu0 %v612_v1  ;;  %v647_v40 = vld [vmem:[#allocation6 + $0x378] sm:$0xff]  ;;  %739 = vmatpush.msrb.mxu3 %v662_v38  ;;  %v638_v38 = vld [vmem:[#allocation6 + $0x330] sm:$0xff] }
  0xc2   : > { %321 = vrot.lane.b32.xlu2 %v314_v2, %s1711_s23  ;;  %470 = vmatpush.msra.mxu2 %v373_v41  ;;  %v661_v41 = vld [vmem:[#allocation6 + $0x3e8] sm:$0xff] }
  0xc3   : > { %673 = vmatpush.msrb.mxu0 %v611_v23  ;;  %692 = vmatpush.msrb.mxu1 %v631_v39  ;;  %v643_v23 = vld [vmem:[#allocation6 + $0x358] sm:$0xff]  ;;  %v621_v39 = vld [vmem:[#allocation6 + $0x2a8] sm:$0xff] }
  0xc4   : > { %715 = vmatpush.msrb.mxu2 %v647_v40  ;;  %740 = vmatpush.msrb.mxu3 %v661_v41  ;;  %v651_v40 = vld [vmem:[#allocation6 + $0x398] sm:$0xff]  ;;  %v637_v41 = vld [vmem:[#allocation6 + $0x328] sm:$0xff] }
  0xc5   : > { %323 = vrot.lane.b32.xlu1 %v316_v4, %s1711_s23  ;;  %674 = vmatpush.msrb.mxu0 %v610_v24  ;;  %v626_v24 = vld [vmem:[#allocation6 + $0x2d0] sm:$0xff] }
  0xc7   : > { %675 = vmatpush.msrb.mxu0 %v609_v25  ;;  %v656_v25 = vld [vmem:[#allocation6 + $0x3c0] sm:$0xff] }
  0xc9   : > { %676 = vmatpush.msrb.mxu0 %v608_v26  ;;  %v642_v26 = vld [vmem:[#allocation6 + $0x350] sm:$0xff] }
  0xca   : > { %325 = vrot.lane.b32.xlu2 %v318_v6, %s1711_s23 }
  0xcb   : > { %677 = vmatpush.msrb.mxu0 %v607_v27  ;;  %v625_v27 = vld [vmem:[#allocation6 + $0x2c8] sm:$0xff] }
  0xcd   : > { %678 = vmatpush.msrb.mxu0 %v606_v28  ;;  %v655_v28 = vld [vmem:[#allocation6 + $0x3b8] sm:$0xff] }
  0xcf   : > { %679 = vmatpush.msrb.mxu0 %v605_v29  ;;  %v641_v29 = vld [vmem:[#allocation6 + $0x348] sm:$0xff] }
  0xd1   : > { %680 = vmatpush.msrb.mxu0 %v604_v30  ;;  %v624_v30 = vld [vmem:[#allocation6 + $0x2c0] sm:$0xff] }
  0xd3   : > { %681 = vmatpush.msrb.mxu0 %v603_v31  ;;  %v654_v31 = vld [vmem:[#allocation6 + $0x3b0] sm:$0xff] }
  0xd5   : > { %682 = vmatpush.msrb.mxu0 %v602_v32  ;;  %v640_v32 = vld [vmem:[#allocation6 + $0x340] sm:$0xff] }
  0xd7   : > { %683 = vmatpush.msrb.mxu0 %v601_v33  ;;  %v623_v33 = vld [vmem:[#allocation6 + $0x2b8] sm:$0xff] }
  0xd9   : > { %684 = vmatpush.msrb.mxu0 %v600_v34  ;;  %v653_v34 = vld [vmem:[#allocation6 + $0x3a8] sm:$0xff] }
 0x114   : > { %v320_v42 = vpop.permute.xlu2 %319 }
 0x11c   : > { %v322_v43 = vpop.permute.xlu2 %321 }
 0x11d   : > { %v328_v44 = vsel %vm327_vm11, %v320_v42, %v322_v43 }
 0x11e   : > { %1406 = vmatmul.msk.f32.vlgmr.msra.gmra.mxu3 %vm338_vm12, %v328_v44 }
 0x124   : > { %v326_v56 = vpop.permute.xlu2 %325 }
 0x12c   : > { %v426_v2 = vpop.f32.mrf.mxu0 }
 0x12d   : > { %v427_v5 = vadd.f32 %v1537_v3, %v426_v2 }
 0x12f   : > { %v1499_v45 = vpop.permute.xlu1 %1498  ;;  %v1504_v52 = vpop.permute.xlu0 %1503 }
 0x130   : > { %v1501_v46 = vunpack.i.h.bf16 %v1499_v45  ;;  %v1500_v48 = vunpack.i.l.bf16 %v1499_v45  ;;  %v1506_v54 = vunpack.i.h.bf16 %v1504_v52  ;;  %v1505_v55 = vunpack.i.l.bf16 %v1504_v52 }
 0x132   : > { %v334_v50 = vsel %vm225_vm0, %v262_v49, %v1500_v48  ;;  %v298_v51 = vsel %vm225_vm0, %v1500_v48, %v1501_v46  ;;  %v335_v59 = vsel %vm225_vm0, %v1862_v47, %v1505_v55  ;;  %v299_v60 = vsel %vm225_vm0, %v1505_v55, %v1506_v54 }
 0x133   : > { %448 = vmatmul.f32.vlgmr.msra.gmra.mxu1 %v334_v50  ;;  %v336_v53 = vsel %vm327_vm11, %v298_v51, %v320_v42 }
 0x134   : > { %471 = vmatmul.f32.vlgmr.msra.gmra.mxu2 %v336_v53  ;;  %v429_v8 = vpop.f32.mrf.mxu0 }
 0x135   : > { %v430_v12 = vadd.f32 %v1537_v3, %v429_v8 }
 0x137   : > { %v324_v57 = vpop.permute.xlu1 %323 }
 0x138   : > { %v329_v58 = vsel %vm327_vm11, %v324_v57, %v326_v56  ;;  %v337_v61 = vsel %vm327_vm11, %v299_v60, %v324_v57 }
 0x139   : > { %1407 = vmatmul.msk.f32.gmra.mxu3 %vm338_vm12, %v329_v58 }
 0x13b   : > { %451 = vmatmul.f32.gmra.mxu1 %v335_v59 }
 0x13c   : > { %474 = vmatmul.f32.gmra.mxu2 %v337_v61 }
 0x1a1   : > { %v495_v9 = vpop.f32.mrf.mxu3 }
 0x1b0   : > { %v449_v4 = vpop.f32.mrf.mxu1 }
 0x1b1   : > { %v450_v6 = vadd.f32 %v449_v4, %v427_v5 }
 0x1b7   : > { %v472_v47 = vpop.f32.mrf.mxu2 }
 0x1b8   : > { %v473_v7 = vadd.f32 %v472_v47, %v450_v6  ;;  %v452_v11 = vpop.f32.mrf.mxu1 }
 0x1b9   : > { %v453_v15 = vadd.f32 %v452_v11, %v430_v12  ;;  %v630_v12 = vld [vmem:[#allocation6 + $0x2f0] sm:$0xff] }
 0x1ba   : > { %v496_v10 = vadd.f32 %v495_v9, %v473_v7  ;;  %693 = vmatpush.msrb.mxu1 %v630_v12  ;;  %v874_v12 = vld [vmem:[#allocation6 + $0x470] sm:$0xff] }
 0x1bc   : > { %v501_v13 = vmax.f32 %v496_v10, 0.0  ;;  %v498_v18 = vpop.f32.mrf.mxu3 }
 0x1be   : > { %v505_v14 = vrot.slane %v501_v13, 7  ;;  %v660_v13 = vld [vmem:[#allocation6 + $0x3e0] sm:$0xff] }
 0x1bf   : > { %v475_v16 = vpop.f32.mrf.mxu2  ;;  %741 = vmatpush.msrb.mxu3 %v660_v13  ;;  %v873_v13 = vld [vmem:[#allocation6 + $0x468] sm:$0xff] }
 0x1c0   : > { %v476_v17 = vadd.f32 %v475_v16, %v453_v15  ;;  %508 = vrot.lane.b32.xlu0 %v505_v14, %s1710_s18  ;;  %v629_v15 = vld [vmem:[#allocation6 + $0x2e8] sm:$0xff]  ;;  %v659_v16 = vld [vmem:[#allocation6 + $0x3d8] sm:$0xff] }
 0x1c1   : > { %694 = vmatpush.msrb.mxu1 %v629_v15  ;;  %742 = vmatpush.msrb.mxu3 %v659_v16  ;;  %v1538_v16 = vld [vmem:[#allocation8 + $0x1] ss:$0 sm:$0xff] }
 0x1c2   : > { %v499_v19 = vadd.f32 %v498_v18, %v476_v17  ;;  %v645_v17 = vld [vmem:[#allocation6 + $0x368] sm:$0xff]  ;;  %v628_v18 = vld [vmem:[#allocation6 + $0x2e0] sm:$0xff] }
 0x1c3   : > { %695 = vmatpush.msrb.mxu1 %v628_v18 }
 0x1c4   : > { %v502_v20 = vmax.f32 %v499_v19, 0.0  ;;  %v658_v19 = vld [vmem:[#allocation6 + $0x3d0] sm:$0xff] }
 0x1c5   : > { %743 = vmatpush.msrb.mxu3 %v658_v19 }
 0x1c6   : > { %v506_v21 = vrot.slane %v502_v20, 7  ;;  %v644_v20 = vld [vmem:[#allocation6 + $0x360] sm:$0xff] }
 0x1c8   : > { %512 = vrot.lane.b32.xlu2 %v506_v21, %s1710_s18  ;;  %v507_v22 = vsel %vm236_vm1, %v505_v14, %v506_v21  ;;  %v646_v14 = vld [vmem:[#allocation6 + $0x370] sm:$0xff]  ;;  %v627_v21 = vld [vmem:[#allocation6 + $0x2d8] sm:$0xff] }
 0x1c9   : > { %510 = vrot.lane.b32.xlu1 %v507_v22, %s1710_s18  ;;  %716 = vmatpush.msrb.mxu2 %v646_v14  ;;  %v657_v22 = vld [vmem:[#allocation6 + $0x3c8] sm:$0xff]  ;;  %v872_v14 = vld [vmem:[#allocation6 + $0x460] sm:$0xff] }
 0x1ca   : > { %696 = vmatpush.msrb.mxu1 %v627_v21  ;;  %744 = vmatpush.msrb.mxu3 %v657_v22 }
 0x1cb   : > { %717 = vmatpush.msrb.mxu2 %v645_v17 }
 0x1cc   : > { %697 = vmatpush.msrb.mxu1 %v626_v24  ;;  %745 = vmatpush.msrb.mxu3 %v656_v25 }
 0x1cd   : > { %718 = vmatpush.msrb.mxu2 %v644_v20 }
 0x1ce   : > { %698 = vmatpush.msrb.mxu1 %v625_v27  ;;  %746 = vmatpush.msrb.mxu3 %v655_v28 }
 0x1cf   : > { %719 = vmatpush.msrb.mxu2 %v643_v23 }
 0x1d0   : > { %699 = vmatpush.msrb.mxu1 %v624_v30  ;;  %747 = vmatpush.msrb.mxu3 %v654_v31 }
 0x1d1   : > { %720 = vmatpush.msrb.mxu2 %v642_v26 }
 0x1d2   : > { %700 = vmatpush.msrb.mxu1 %v623_v33  ;;  %748 = vmatpush.msrb.mxu3 %v653_v34 }
 0x1d3   : > { %721 = vmatpush.msrb.mxu2 %v641_v29 }
 0x1d4   : > { %749 = vmatpush.msrb.mxu3 %v652_v37  ;;  %v870_v37 = vld [vmem:[#allocation6 + $0x450] sm:$0xff] }
 0x1d5   : > { %722 = vmatpush.msrb.mxu2 %v640_v32 }
 0x1d6   : > { %750 = vmatpush.msrb.mxu3 %v651_v40  ;;  %v867_v40 = vld [vmem:[#allocation6 + $0x438] sm:$0xff] }
 0x222   : > { %v513_v35 = vpop.permute.xlu2 %512 }
 0x223   : > { %521 = vst.msk [vmem:[#allocation2 + $0x20] sm:$0x1] %vm257_vm5, %v513_v35 }
 0x224   : > { %522 = vst.msk [vmem:[#allocation2 + $0x28] sm:$0x1] %vm259_vm6, %v513_v35  ;;  %v639_v35 = vld [vmem:[#allocation6 + $0x338] sm:$0xff] }
 0x225   : > { %723 = vmatpush.msrb.mxu2 %v639_v35 }
 0x227   : > { %724 = vmatpush.msrb.mxu2 %v638_v38  ;;  %v869_v38 = vld [vmem:[#allocation6 + $0x448] sm:$0xff] }
 0x229   : > { %725 = vmatpush.msrb.mxu2 %v637_v41  ;;  %v866_v41 = vld [vmem:[#allocation6 + $0x430] sm:$0xff] }
 0x22a   : > { %v529_v0 = vld [vmem:[#allocation2 + $0x20] sm:$0x1] }
 0x22b   : > { %v530_v1 = vld [vmem:[#allocation2 + $0x28] sm:$0x1]  ;;  %v533_v2 = vld [vmem:[#allocation2 + $0x20] sm:$0x3]  ;;  %v547_v4 = vrot.slane %v529_v0, 1 }
 0x22c   : > { %v534_v3 = vld [vmem:[#allocation2 + $0x28] sm:$0x3]  ;;  %v549_v5 = vrot.slane %v530_v1, 1  ;;  %v575_v6 = vrot.slane %v533_v2, 2 }
 0x22d   : > { %v577_v47 = vrot.slane %v534_v3, 2 }
 0x232   : > { %v509_v36 = vpop.permute.xlu0 %508 }
 0x233   : > { %517 = vst.msk [vmem:[#allocation2] sm:$0xfe] %vm249_vm3, %v509_v36 }
 0x234   : > { %518 = vst.msk [vmem:[#allocation2 + $0x8] sm:$0xfe] %vm251_vm4, %v509_v36  ;;  %v622_v36 = vld [vmem:[#allocation6 + $0x2b0] sm:$0xff] }
 0x235   : > { %701 = vmatpush.msrb.mxu1 %v622_v36  ;;  %v871_v36 = vld [vmem:[#allocation6 + $0x458] sm:$0xff] }
 0x237   : > { %702 = vmatpush.msrb.mxu1 %v621_v39  ;;  %v868_v39 = vld [vmem:[#allocation6 + $0x440] sm:$0xff] }
 0x23a   : > { %v523_v42 = vld [vmem:[#allocation2] sm:$0xff] }
 0x23b   : > { %685 = vmatmul.f32.vlgmr.msrb.gmra.mxu0 %v523_v42  ;;  %v511_v43 = vpop.permute.xlu1 %510  ;;  %v531_v44 = vld [vmem:[#allocation2] sm:$0xfc]  ;;  %v532_v46 = vld [vmem:[#allocation2 + $0x8] sm:$0xfc]  ;;  %v620_v42 = vld [vmem:[#allocation6 + $0x2a0] sm:$0xff] }
 0x23c   : > { %519 = vst.msk [vmem:[#allocation2 + $0x10] sm:$0xff] %vm253_vm7, %v511_v43  ;;  %v527_v45 = vld [vmem:[#allocation2] sm:$0xfe]  ;;  %v528_v48 = vld [vmem:[#allocation2 + $0x8] sm:$0xfe]  ;;  %v569_v52 = vrot.slane %v531_v44, 2  ;;  %703 = vmatpush.msrb.mxu1 %v620_v42 }
 0x23d   : > { %520 = vst.msk [vmem:[#allocation2 + $0x18] sm:$0xff] %vm255_vm8, %v511_v43  ;;  %v541_v54 = vrot.slane %v527_v45, 1  ;;  %v572_v55 = vrot.slane %v532_v46, 2  ;;  %v544_v57 = vrot.slane %v528_v48, 1  ;;  %v650_v43 = vld [vmem:[#allocation6 + $0x390] sm:$0xff]  ;;  %v636_v44 = vld [vmem:[#allocation6 + $0x320] sm:$0xff] }
 0x23e   : > { %751 = vmatpush.msrb.mxu3 %v650_v43  ;;  %726 = vmatpush.msrb.mxu2 %v636_v44  ;;  %v619_v45 = vld [vmem:[#allocation6 + $0x298] sm:$0xff]  ;;  %v649_v46 = vld [vmem:[#allocation6 + $0x388] sm:$0xff]  ;;  %v864_v43 = vld [vmem:[#allocation6 + $0x420] sm:$0xff] }
 0x23f   : > { %v635_v48 = vld [vmem:[#allocation6 + $0x318] sm:$0xff]  ;;  %704 = vmatpush.msrb.mxu1 %v619_v45  ;;  %v865_v42 = vld [vmem:[#allocation6 + $0x428] sm:$0xff]  ;;  %v862_v45 = vld [vmem:[#allocation6 + $0x410] sm:$0xff] }
 0x240   : > { %752 = vmatpush.msrb.mxu3 %v649_v46  ;;  %727 = vmatpush.msrb.mxu2 %v635_v48  ;;  %v863_v44 = vld [vmem:[#allocation6 + $0x418] sm:$0xff]  ;;  %v861_v46 = vld [vmem:[#allocation6 + $0x408] sm:$0xff]  ;;  %v860_v48 = vld [vmem:[#allocation6 + $0x400] sm:$0xff] }
 0x243   : > { %v525_v49 = vld [vmem:[#allocation2 + $0x10] sm:$0xff] }
 0x244   : > { %v542_v50 = vrot.slane %v525_v49, 1  ;;  %688 = vmatmul.f32.gmra.mxu0 %v525_v49  ;;  %v1901_v51 = vld [vmem:[#allocation2 + $0x18] sm:$0xff]  ;;  %v570_v53 = vrot.slane %v525_v49, 2  ;;  %v618_v49 = vld [vmem:[#allocation6 + $0x290] sm:$0xff] }
 0x245   : > { %v573_v56 = vrot.slane %v1901_v51, 2  ;;  %v545_v58 = vrot.slane %v1901_v51, 1  ;;  %705 = vmatpush.msrb.mxu1 %v618_v49 }
 0x246   : > { %v571_v59 = vsel %vm308_vm9, %v569_v52, %v570_v53  ;;  %v543_v60 = vsel %vm279_vm10, %v541_v54, %v542_v50  ;;  %v548_v7 = vsel %vm279_vm10, %v542_v50, %v547_v4  ;;  %v576_v9 = vsel %vm308_vm9, %v570_v53, %v575_v6  ;;  %v648_v50 = vld [vmem:[#allocation6 + $0x380] sm:$0xff]  ;;  %v634_v52 = vld [vmem:[#allocation6 + $0x310] sm:$0xff]  ;;  %v617_v53 = vld [vmem:[#allocation6 + $0x288] sm:$0xff] }
 0x247   : > { %v574_v61 = vsel %vm308_vm9, %v572_v55, %v573_v56  ;;  %579 = vrot.lane.b32.xlu1 %v571_v59, %s1711_s23  ;;  %v546_v62 = vsel %vm279_vm10, %v544_v57, %v545_v58  ;;  %v550_v8 = vsel %vm279_vm10, %v545_v58, %v549_v5  ;;  %v578_v10 = vsel %vm308_vm9, %v573_v56, %v577_v47  ;;  %v633_v54 = vld [vmem:[#allocation6 + $0x308] sm:$0xff]  ;;  %v616_v55 = vld [vmem:[#allocation6 + $0x280] sm:$0xff] }
 0x248   : > { %581 = vrot.lane.b32.xlu2 %v574_v61, %s1711_s23  ;;  %v1507_v63 = vpack.i.bf16 %v546_v62, %v543_v60  ;;  %v1512_v11 = vpack.i.bf16 %v550_v8, %v548_v7  ;;  %753 = vmatpush.msrb.mxu3 %v648_v50  ;;  %v632_v56 = vld [vmem:[#allocation6 + $0x300] sm:$0xff] }
 0x249   : > { %728 = vmatpush.msrb.mxu2 %v634_v52  ;;  %706 = vmatpush.msrb.mxu1 %v617_v53  ;;  %v923_v52 = vld [vmem:[#allocation6 + $0x5f8] sm:$0xff]  ;;  %v922_v53 = vld [vmem:[#allocation6 + $0x5f0] sm:$0xff] }
 0x24a   : > { %1508 = vrot.lane.b32.xlu0 %v1507_v63, %s1712_s29  ;;  %v524_v63 = vld [vmem:[#allocation2 + $0x8] sm:$0xff]  ;;  %998 = vmatpush.msra.mxu3 %v923_v52  ;;  %v912_v52 = vld [vmem:[#allocation6 + $0x5a0] sm:$0xff] }
 0x24b   : > { %729 = vmatpush.msrb.mxu2 %v633_v54  ;;  %707 = vmatpush.msrb.mxu1 %v616_v55  ;;  %v891_v54 = vld [vmem:[#allocation6 + $0x4f8] sm:$0xff] }
 0x24c   : > { %v907_v55 = vld [vmem:[#allocation6 + $0x578] sm:$0xff]  ;;  %999 = vmatpush.msra.mxu3 %v922_v53  ;;  %v898_v53 = vld [vmem:[#allocation6 + $0x530] sm:$0xff] }
 0x24d   : > { %730 = vmatpush.msrb.mxu2 %v632_v56  ;;  %952 = vmatpush.msra.mxu1 %v891_v54  ;;  %v921_v56 = vld [vmem:[#allocation6 + $0x5e8] sm:$0xff] }
 0x24e   : > { %1000 = vmatpush.msra.mxu3 %v921_v56  ;;  %v881_v54 = vld [vmem:[#allocation6 + $0x4a8] sm:$0xff] }
 0x24f   : > { %583 = vrot.lane.b32.xlu1 %v576_v9, %s1711_s23  ;;  %975 = vmatpush.msra.mxu2 %v907_v55  ;;  %v911_v55 = vld [vmem:[#allocation6 + $0x598] sm:$0xff]  ;;  %v897_v56 = vld [vmem:[#allocation6 + $0x528] sm:$0xff] }
 0x250   : > { %585 = vrot.lane.b32.xlu2 %v578_v10, %s1711_s23 }
 0x252   : > { %1513 = vrot.lane.b32.xlu0 %v1512_v11, %s1712_s29  ;;  %v875_v11 = vld [vmem:[#allocation6 + $0x478] sm:$0xff] }
 0x253   : > { %929 = vmatpush.msra.mxu0 %v875_v11 }
 0x255   : > { %930 = vmatpush.msra.mxu0 %v874_v12 }
 0x257   : > { %931 = vmatpush.msra.mxu0 %v873_v13 }
 0x259   : > { %932 = vmatpush.msra.mxu0 %v872_v14 }
 0x25b   : > { %933 = vmatpush.msra.mxu0 %v871_v36  ;;  %v903_v36 = vld [vmem:[#allocation6 + $0x558] sm:$0xff] }
 0x25d   : > { %934 = vmatpush.msra.mxu0 %v870_v37  ;;  %v886_v37 = vld [vmem:[#allocation6 + $0x4d0] sm:$0xff] }
 0x25f   : > { %935 = vmatpush.msra.mxu0 %v869_v38  ;;  %v916_v38 = vld [vmem:[#allocation6 + $0x5c0] sm:$0xff] }
 0x261   : > { %936 = vmatpush.msra.mxu0 %v868_v39  ;;  %v902_v39 = vld [vmem:[#allocation6 + $0x550] sm:$0xff] }
 0x263   : > { %937 = vmatpush.msra.mxu0 %v867_v40  ;;  %v885_v40 = vld [vmem:[#allocation6 + $0x4c8] sm:$0xff] }
 0x265   : > { %938 = vmatpush.msra.mxu0 %v866_v41  ;;  %v915_v41 = vld [vmem:[#allocation6 + $0x5b8] sm:$0xff] }
 0x267   : > { %939 = vmatpush.msra.mxu0 %v865_v42  ;;  %v901_v42 = vld [vmem:[#allocation6 + $0x548] sm:$0xff] }
 0x269   : > { %940 = vmatpush.msra.mxu0 %v864_v43  ;;  %v884_v43 = vld [vmem:[#allocation6 + $0x4c0] sm:$0xff] }
 0x26b   : > { %941 = vmatpush.msra.mxu0 %v863_v44  ;;  %v914_v44 = vld [vmem:[#allocation6 + $0x5b0] sm:$0xff] }
 0x26d   : > { %942 = vmatpush.msra.mxu0 %v862_v45  ;;  %v900_v45 = vld [vmem:[#allocation6 + $0x540] sm:$0xff] }
 0x26f   : > { %943 = vmatpush.msra.mxu0 %v861_v46  ;;  %v883_v46 = vld [vmem:[#allocation6 + $0x4b8] sm:$0xff] }
 0x271   : > { %944 = vmatpush.msra.mxu0 %v860_v48  ;;  %v913_v48 = vld [vmem:[#allocation6 + $0x5a8] sm:$0xff] }
 0x2a2   : > { %v582_v57 = vpop.permute.xlu2 %581 }
 0x2aa   : > { %v586_v3 = vpop.permute.xlu2 %585 }
 0x2b8   : > { %v686_v15 = vpop.f32.mrf.mxu0 }
 0x2b9   : > { %v580_v58 = vpop.permute.xlu1 %579  ;;  %v687_v18 = vadd.f32 %v1538_v16, %v686_v15 }
 0x2ba   : > { %v587_v59 = vsel %vm327_vm11, %v580_v58, %v582_v57 }
 0x2bb   : > { %1408 = vmatmul.msk.f32.vlgmr.msrb.gmra.mxu3 %vm338_vm12, %v587_v59 }
 0x2bc   : > { %v1509_v60 = vpop.permute.xlu0 %1508 }
 0x2bd   : > { %v1511_v61 = vunpack.i.h.bf16 %v1509_v60  ;;  %v1510_v62 = vunpack.i.l.bf16 %v1509_v60 }
 0x2bf   : > { %v593_v0 = vsel %vm225_vm0, %v524_v63, %v1510_v62  ;;  %v559_v1 = vsel %vm225_vm0, %v1510_v62, %v1511_v61 }
 0x2c0   : > { %708 = vmatmul.f32.vlgmr.msrb.gmra.mxu1 %v593_v0  ;;  %v595_v2 = vsel %vm327_vm11, %v559_v1, %v580_v58 }
 0x2c1   : > { %731 = vmatmul.f32.vlgmr.msrb.gmra.mxu2 %v595_v2  ;;  %v584_v4 = vpop.permute.xlu1 %583  ;;  %v689_v22 = vpop.f32.mrf.mxu0 }
 0x2c2   : > { %v588_v5 = vsel %vm327_vm11, %v584_v4, %v586_v3  ;;  %v690_v25 = vadd.f32 %v1538_v16, %v689_v22 }
 0x2c3   : > { %1409 = vmatmul.msk.f32.gmra.mxu3 %vm338_vm12, %v588_v5 }
 0x2c4   : > { %v1514_v6 = vpop.permute.xlu0 %1513 }
 0x2c5   : > { %v1516_v47 = vunpack.i.h.bf16 %v1514_v6  ;;  %v1515_v7 = vunpack.i.l.bf16 %v1514_v6 }
 0x2c7   : > { %v594_v8 = vsel %vm225_vm0, %v1901_v51, %v1515_v7  ;;  %v560_v9 = vsel %vm225_vm0, %v1515_v7, %v1516_v47 }
 0x2c8   : > { %711 = vmatmul.f32.gmra.mxu1 %v594_v8  ;;  %v596_v10 = vsel %vm327_vm11, %v560_v9, %v584_v4 }
 0x2c9   : > { %734 = vmatmul.f32.gmra.mxu2 %v596_v10 }
 0x33d   : > { %v709_v17 = vpop.f32.mrf.mxu1 }
 0x33e   : > { %v710_v19 = vadd.f32 %v709_v17, %v687_v18  ;;  %v755_v51 = vpop.f32.mrf.mxu3 }
 0x344   : > { %v732_v20 = vpop.f32.mrf.mxu2 }
 0x345   : > { %v733_v21 = vadd.f32 %v732_v20, %v710_v19  ;;  %v712_v24 = vpop.f32.mrf.mxu1 }
 0x346   : > { %v713_v28 = vadd.f32 %v712_v24, %v690_v25  ;;  %v758_v31 = vpop.f32.mrf.mxu3  ;;  %v890_v25 = vld [vmem:[#allocation6 + $0x4f0] sm:$0xff] }
 0x347   : > { %v756_v23 = vadd.f32 %v755_v51, %v733_v21  ;;  %953 = vmatpush.msra.mxu1 %v890_v25  ;;  %v1134_v25 = vld [vmem:[#allocation6 + $0x670] sm:$0xff] }
 0x349   : > { %v761_v26 = vmax.f32 %v756_v23, 0.0 }
 0x34b   : > { %v765_v27 = vrot.slane %v761_v26, 7  ;;  %v920_v26 = vld [vmem:[#allocation6 + $0x5e0] sm:$0xff] }
 0x34c   : > { %v735_v29 = vpop.f32.mrf.mxu2  ;;  %1001 = vmatpush.msra.mxu3 %v920_v26  ;;  %v1133_v26 = vld [vmem:[#allocation6 + $0x668] sm:$0xff] }
 0x34d   : > { %v736_v30 = vadd.f32 %v735_v29, %v713_v28  ;;  %768 = vrot.lane.b32.xlu0 %v765_v27, %s1710_s18  ;;  %v889_v28 = vld [vmem:[#allocation6 + $0x4e8] sm:$0xff]  ;;  %v919_v29 = vld [vmem:[#allocation6 + $0x5d8] sm:$0xff] }
 0x34e   : > { %954 = vmatpush.msra.mxu1 %v889_v28  ;;  %1002 = vmatpush.msra.mxu3 %v919_v29  ;;  %v1539_v29 = vld [vmem:[#allocation8 + $0x2] ss:$0 sm:$0xff] }
 0x34f   : > { %v759_v32 = vadd.f32 %v758_v31, %v736_v30  ;;  %v905_v30 = vld [vmem:[#allocation6 + $0x568] sm:$0xff]  ;;  %v888_v31 = vld [vmem:[#allocation6 + $0x4e0] sm:$0xff] }
 0x350   : > { %955 = vmatpush.msra.mxu1 %v888_v31 }
 0x351   : > { %v762_v33 = vmax.f32 %v759_v32, 0.0  ;;  %v918_v32 = vld [vmem:[#allocation6 + $0x5d0] sm:$0xff] }
 0x352   : > { %1003 = vmatpush.msra.mxu3 %v918_v32 }
 0x353   : > { %v766_v34 = vrot.slane %v762_v33, 7  ;;  %v904_v33 = vld [vmem:[#allocation6 + $0x560] sm:$0xff] }
 0x355   : > { %772 = vrot.lane.b32.xlu2 %v766_v34, %s1710_s18  ;;  %v767_v35 = vsel %vm236_vm1, %v765_v27, %v766_v34  ;;  %v906_v27 = vld [vmem:[#allocation6 + $0x570] sm:$0xff]  ;;  %v887_v34 = vld [vmem:[#allocation6 + $0x4d8] sm:$0xff] }
 0x356   : > { %770 = vrot.lane.b32.xlu1 %v767_v35, %s1710_s18  ;;  %976 = vmatpush.msra.mxu2 %v906_v27  ;;  %v917_v35 = vld [vmem:[#allocation6 + $0x5c8] sm:$0xff]  ;;  %v1132_v27 = vld [vmem:[#allocation6 + $0x660] sm:$0xff] }
 0x357   : > { %956 = vmatpush.msra.mxu1 %v887_v34  ;;  %1004 = vmatpush.msra.mxu3 %v917_v35 }
 0x358   : > { %977 = vmatpush.msra.mxu2 %v905_v30 }
 0x359   : > { %957 = vmatpush.msra.mxu1 %v886_v37  ;;  %1005 = vmatpush.msra.mxu3 %v916_v38 }
 0x35a   : > { %978 = vmatpush.msra.mxu2 %v904_v33 }
 0x35b   : > { %958 = vmatpush.msra.mxu1 %v885_v40  ;;  %1006 = vmatpush.msra.mxu3 %v915_v41 }
 0x35c   : > { %979 = vmatpush.msra.mxu2 %v903_v36 }
 0x35d   : > { %959 = vmatpush.msra.mxu1 %v884_v43  ;;  %1007 = vmatpush.msra.mxu3 %v914_v44 }
 0x35e   : > { %980 = vmatpush.msra.mxu2 %v902_v39 }
 0x35f   : > { %960 = vmatpush.msra.mxu1 %v883_v46  ;;  %1008 = vmatpush.msra.mxu3 %v913_v48 }
 0x360   : > { %981 = vmatpush.msra.mxu2 %v901_v42 }
 0x361   : > { %1009 = vmatpush.msra.mxu3 %v912_v52  ;;  %v1130_v52 = vld [vmem:[#allocation6 + $0x650] sm:$0xff] }
 0x362   : > { %982 = vmatpush.msra.mxu2 %v900_v45 }
 0x363   : > { %1010 = vmatpush.msra.mxu3 %v911_v55  ;;  %v1127_v55 = vld [vmem:[#allocation6 + $0x638] sm:$0xff] }
 0x3af   : > { %v773_v49 = vpop.permute.xlu2 %772 }
 0x3b0   : > { %781 = vst.msk [vmem:[#allocation2 + $0x20] sm:$0x1] %vm257_vm5, %v773_v49 }
 0x3b1   : > { %782 = vst.msk [vmem:[#allocation2 + $0x28] sm:$0x1] %vm259_vm6, %v773_v49  ;;  %v899_v49 = vld [vmem:[#allocation6 + $0x538] sm:$0xff] }
 0x3b2   : > { %983 = vmatpush.msra.mxu2 %v899_v49 }
 0x3b4   : > { %984 = vmatpush.msra.mxu2 %v898_v53  ;;  %v1129_v53 = vld [vmem:[#allocation6 + $0x648] sm:$0xff] }
 0x3b6   : > { %985 = vmatpush.msra.mxu2 %v897_v56  ;;  %v1126_v56 = vld [vmem:[#allocation6 + $0x630] sm:$0xff] }
 0x3b7   : > { %v789_v13 = vld [vmem:[#allocation2 + $0x20] sm:$0x1] }
 0x3b8   : > { %v790_v14 = vld [vmem:[#allocation2 + $0x28] sm:$0x1]  ;;  %v793_v15 = vld [vmem:[#allocation2 + $0x20] sm:$0x3]  ;;  %v807_v17 = vrot.slane %v789_v13, 1 }
 0x3b9   : > { %v794_v16 = vld [vmem:[#allocation2 + $0x28] sm:$0x3]  ;;  %v809_v18 = vrot.slane %v790_v14, 1  ;;  %v835_v19 = vrot.slane %v793_v15, 2 }
 0x3ba   : > { %v837_v51 = vrot.slane %v794_v16, 2 }
 0x3bf   : > { %v769_v50 = vpop.permute.xlu0 %768 }
 0x3c0   : > { %777 = vst.msk [vmem:[#allocation2] sm:$0xfe] %vm249_vm3, %v769_v50 }
 0x3c1   : > { %778 = vst.msk [vmem:[#allocation2 + $0x8] sm:$0xfe] %vm251_vm4, %v769_v50  ;;  %v882_v50 = vld [vmem:[#allocation6 + $0x4b0] sm:$0xff] }
 0x3c2   : > { %961 = vmatpush.msra.mxu1 %v882_v50  ;;  %v1131_v50 = vld [vmem:[#allocation6 + $0x658] sm:$0xff] }
 0x3c4   : > { %962 = vmatpush.msra.mxu1 %v881_v54  ;;  %v1128_v54 = vld [vmem:[#allocation6 + $0x640] sm:$0xff] }
 0x3c7   : > { %v783_v57 = vld [vmem:[#allocation2] sm:$0xff] }
 0x3c8   : > { %945 = vmatmul.f32.vlgmr.msra.gmra.mxu0 %v783_v57  ;;  %v771_v58 = vpop.permute.xlu1 %770  ;;  %v791_v59 = vld [vmem:[#allocation2] sm:$0xfc]  ;;  %v792_v61 = vld [vmem:[#allocation2 + $0x8] sm:$0xfc]  ;;  %v880_v57 = vld [vmem:[#allocation6 + $0x4a0] sm:$0xff] }
 0x3c9   : > { %779 = vst.msk [vmem:[#allocation2 + $0x10] sm:$0xff] %vm253_vm7, %v771_v58  ;;  %v787_v60 = vld [vmem:[#allocation2] sm:$0xfe]  ;;  %v788_v62 = vld [vmem:[#allocation2 + $0x8] sm:$0xfe]  ;;  %v829_v2 = vrot.slane %v791_v59, 2  ;;  %963 = vmatpush.msra.mxu1 %v880_v57 }
 0x3ca   : > { %780 = vst.msk [vmem:[#allocation2 + $0x18] sm:$0xff] %vm255_vm8, %v771_v58  ;;  %v801_v4 = vrot.slane %v787_v60, 1  ;;  %v832_v5 = vrot.slane %v792_v61, 2  ;;  %v804_v47 = vrot.slane %v788_v62, 1  ;;  %v910_v58 = vld [vmem:[#allocation6 + $0x590] sm:$0xff]  ;;  %v896_v59 = vld [vmem:[#allocation6 + $0x520] sm:$0xff] }
 0x3cb   : > { %1011 = vmatpush.msra.mxu3 %v910_v58  ;;  %986 = vmatpush.msra.mxu2 %v896_v59  ;;  %v879_v60 = vld [vmem:[#allocation6 + $0x498] sm:$0xff]  ;;  %v909_v61 = vld [vmem:[#allocation6 + $0x588] sm:$0xff]  ;;  %v1124_v58 = vld [vmem:[#allocation6 + $0x620] sm:$0xff] }
 0x3cc   : > { %v895_v62 = vld [vmem:[#allocation6 + $0x518] sm:$0xff]  ;;  %964 = vmatpush.msra.mxu1 %v879_v60  ;;  %v1125_v57 = vld [vmem:[#allocation6 + $0x628] sm:$0xff]  ;;  %v1122_v60 = vld [vmem:[#allocation6 + $0x610] sm:$0xff] }
 0x3cd   : > { %1012 = vmatpush.msra.mxu3 %v909_v61  ;;  %987 = vmatpush.msra.mxu2 %v895_v62  ;;  %v1123_v59 = vld [vmem:[#allocation6 + $0x618] sm:$0xff]  ;;  %v1121_v61 = vld [vmem:[#allocation6 + $0x608] sm:$0xff]  ;;  %v1120_v62 = vld [vmem:[#allocation6 + $0x600] sm:$0xff] }
 0x3d0   : > { %v785_v63 = vld [vmem:[#allocation2 + $0x10] sm:$0xff] }
 0x3d1   : > { %v802_v0 = vrot.slane %v785_v63, 1  ;;  %948 = vmatmul.f32.gmra.mxu0 %v785_v63  ;;  %v1940_v1 = vld [vmem:[#allocation2 + $0x18] sm:$0xff]  ;;  %v830_v3 = vrot.slane %v785_v63, 2  ;;  %v878_v63 = vld [vmem:[#allocation6 + $0x490] sm:$0xff] }
 0x3d2   : > { %v833_v6 = vrot.slane %v1940_v1, 2  ;;  %v805_v7 = vrot.slane %v1940_v1, 1  ;;  %965 = vmatpush.msra.mxu1 %v878_v63 }
 0x3d3   : > { %v831_v8 = vsel %vm308_vm9, %v829_v2, %v830_v3  ;;  %v803_v9 = vsel %vm279_vm10, %v801_v4, %v802_v0  ;;  %v808_v20 = vsel %vm279_vm10, %v802_v0, %v807_v17  ;;  %v836_v22 = vsel %vm308_vm9, %v830_v3, %v835_v19  ;;  %v908_v0 = vld [vmem:[#allocation6 + $0x580] sm:$0xff]  ;;  %v894_v2 = vld [vmem:[#allocation6 + $0x510] sm:$0xff]  ;;  %v877_v3 = vld [vmem:[#allocation6 + $0x488] sm:$0xff] }
 0x3d4   : > { %v834_v10 = vsel %vm308_vm9, %v832_v5, %v833_v6  ;;  %839 = vrot.lane.b32.xlu1 %v831_v8, %s1711_s23  ;;  %v806_v11 = vsel %vm279_vm10, %v804_v47, %v805_v7  ;;  %v810_v21 = vsel %vm279_vm10, %v805_v7, %v809_v18  ;;  %v838_v23 = vsel %vm308_vm9, %v833_v6, %v837_v51  ;;  %v893_v4 = vld [vmem:[#allocation6 + $0x508] sm:$0xff]  ;;  %v876_v5 = vld [vmem:[#allocation6 + $0x480] sm:$0xff] }
 0x3d5   : > { %841 = vrot.lane.b32.xlu2 %v834_v10, %s1711_s23  ;;  %v1517_v12 = vpack.i.bf16 %v806_v11, %v803_v9  ;;  %v1522_v24 = vpack.i.bf16 %v810_v21, %v808_v20  ;;  %1013 = vmatpush.msra.mxu3 %v908_v0  ;;  %v892_v6 = vld [vmem:[#allocation6 + $0x500] sm:$0xff] }
 0x3d6   : > { %988 = vmatpush.msra.mxu2 %v894_v2  ;;  %966 = vmatpush.msra.mxu1 %v877_v3  ;;  %v1183_v2 = vld [vmem:[#allocation6 + $0x7f8] sm:$0xff]  ;;  %v1182_v3 = vld [vmem:[#allocation6 + $0x7f0] sm:$0xff] }
 0x3d7   : > { %1518 = vrot.lane.b32.xlu0 %v1517_v12, %s1712_s29  ;;  %v784_v12 = vld [vmem:[#allocation2 + $0x8] sm:$0xff]  ;;  %1258 = vmatpush.msrb.mxu3 %v1183_v2  ;;  %v1172_v2 = vld [vmem:[#allocation6 + $0x7a0] sm:$0xff] }
 0x3d8   : > { %989 = vmatpush.msra.mxu2 %v893_v4  ;;  %967 = vmatpush.msra.mxu1 %v876_v5  ;;  %v1151_v4 = vld [vmem:[#allocation6 + $0x6f8] sm:$0xff] }
 0x3d9   : > { %v1167_v5 = vld [vmem:[#allocation6 + $0x778] sm:$0xff]  ;;  %1259 = vmatpush.msrb.mxu3 %v1182_v3  ;;  %v1158_v3 = vld [vmem:[#allocation6 + $0x730] sm:$0xff] }
 0x3da   : > { %990 = vmatpush.msra.mxu2 %v892_v6  ;;  %1212 = vmatpush.msrb.mxu1 %v1151_v4  ;;  %v1181_v6 = vld [vmem:[#allocation6 + $0x7e8] sm:$0xff] }
 0x3db   : > { %1260 = vmatpush.msrb.mxu3 %v1181_v6  ;;  %v1141_v4 = vld [vmem:[#allocation6 + $0x6a8] sm:$0xff] }
 0x3dc   : > { %843 = vrot.lane.b32.xlu1 %v836_v22, %s1711_s23  ;;  %1235 = vmatpush.msrb.mxu2 %v1167_v5  ;;  %v1171_v5 = vld [vmem:[#allocation6 + $0x798] sm:$0xff]  ;;  %v1157_v6 = vld [vmem:[#allocation6 + $0x728] sm:$0xff] }
 0x3dd   : > { %845 = vrot.lane.b32.xlu2 %v838_v23, %s1711_s23 }
 0x3df   : > { %1523 = vrot.lane.b32.xlu0 %v1522_v24, %s1712_s29  ;;  %v1135_v24 = vld [vmem:[#allocation6 + $0x678] sm:$0xff] }
 0x3e0   : > { %1189 = vmatpush.msrb.mxu0 %v1135_v24 }
 0x3e2   : > { %1190 = vmatpush.msrb.mxu0 %v1134_v25 }
 0x3e4   : > { %1191 = vmatpush.msrb.mxu0 %v1133_v26 }
 0x3e6   : > { %1192 = vmatpush.msrb.mxu0 %v1132_v27 }
 0x3e8   : > { %1193 = vmatpush.msrb.mxu0 %v1131_v50  ;;  %v1163_v50 = vld [vmem:[#allocation6 + $0x758] sm:$0xff] }
 0x3ea   : > { %1194 = vmatpush.msrb.mxu0 %v1130_v52  ;;  %v1146_v52 = vld [vmem:[#allocation6 + $0x6d0] sm:$0xff] }
 0x3ec   : > { %1195 = vmatpush.msrb.mxu0 %v1129_v53  ;;  %v1176_v53 = vld [vmem:[#allocation6 + $0x7c0] sm:$0xff] }
 0x3ee   : > { %1196 = vmatpush.msrb.mxu0 %v1128_v54  ;;  %v1162_v54 = vld [vmem:[#allocation6 + $0x750] sm:$0xff] }
 0x3f0   : > { %1197 = vmatpush.msrb.mxu0 %v1127_v55  ;;  %v1145_v55 = vld [vmem:[#allocation6 + $0x6c8] sm:$0xff] }
 0x3f2   : > { %1198 = vmatpush.msrb.mxu0 %v1126_v56  ;;  %v1175_v56 = vld [vmem:[#allocation6 + $0x7b8] sm:$0xff] }
 0x3f4   : > { %1199 = vmatpush.msrb.mxu0 %v1125_v57  ;;  %v1161_v57 = vld [vmem:[#allocation6 + $0x748] sm:$0xff] }
 0x3f6   : > { %1200 = vmatpush.msrb.mxu0 %v1124_v58  ;;  %v1144_v58 = vld [vmem:[#allocation6 + $0x6c0] sm:$0xff] }
 0x3f8   : > { %1201 = vmatpush.msrb.mxu0 %v1123_v59  ;;  %v1174_v59 = vld [vmem:[#allocation6 + $0x7b0] sm:$0xff] }
 0x3fa   : > { %1202 = vmatpush.msrb.mxu0 %v1122_v60  ;;  %v1160_v60 = vld [vmem:[#allocation6 + $0x740] sm:$0xff] }
 0x3fc   : > { %1203 = vmatpush.msrb.mxu0 %v1121_v61  ;;  %v1143_v61 = vld [vmem:[#allocation6 + $0x6b8] sm:$0xff] }
 0x3fe   : > { %1204 = vmatpush.msrb.mxu0 %v1120_v62  ;;  %v1173_v62 = vld [vmem:[#allocation6 + $0x7a8] sm:$0xff] }
 0x42f   : > { %v842_v47 = vpop.permute.xlu2 %841 }
 0x437   : > { %v846_v16 = vpop.permute.xlu2 %845 }
 0x445   : > { %v946_v28 = vpop.f32.mrf.mxu0 }
 0x446   : > { %v840_v7 = vpop.permute.xlu1 %839  ;;  %v947_v31 = vadd.f32 %v1539_v29, %v946_v28 }
 0x447   : > { %v847_v8 = vsel %vm327_vm11, %v840_v7, %v842_v47 }
 0x448   : > { %1410 = vmatmul.msk.f32.vlgmr.msra.gmra.mxu3 %vm338_vm12, %v847_v8 }
 0x449   : > { %v1519_v9 = vpop.permute.xlu0 %1518 }
 0x44a   : > { %v1521_v10 = vunpack.i.h.bf16 %v1519_v9  ;;  %v1520_v11 = vunpack.i.l.bf16 %v1519_v9 }
 0x44c   : > { %v853_v13 = vsel %vm225_vm0, %v784_v12, %v1520_v11  ;;  %v819_v14 = vsel %vm225_vm0, %v1520_v11, %v1521_v10 }
 0x44d   : > { %968 = vmatmul.f32.vlgmr.msra.gmra.mxu1 %v853_v13  ;;  %v855_v15 = vsel %vm327_vm11, %v819_v14, %v840_v7 }
 0x44e   : > { %991 = vmatmul.f32.vlgmr.msra.gmra.mxu2 %v855_v15  ;;  %v844_v17 = vpop.permute.xlu1 %843  ;;  %v949_v35 = vpop.f32.mrf.mxu0 }
 0x44f   : > { %v848_v18 = vsel %vm327_vm11, %v844_v17, %v846_v16  ;;  %v950_v38 = vadd.f32 %v1539_v29, %v949_v35 }
 0x450   : > { %1411 = vmatmul.msk.f32.gmra.mxu3 %vm338_vm12, %v848_v18 }
 0x451   : > { %v1524_v19 = vpop.permute.xlu0 %1523 }
 0x452   : > { %v1526_v51 = vunpack.i.h.bf16 %v1524_v19  ;;  %v1525_v20 = vunpack.i.l.bf16 %v1524_v19 }
 0x454   : > { %v854_v21 = vsel %vm225_vm0, %v1940_v1, %v1525_v20  ;;  %v820_v22 = vsel %vm225_vm0, %v1525_v20, %v1526_v51 }
 0x455   : > { %971 = vmatmul.f32.gmra.mxu1 %v854_v21  ;;  %v856_v23 = vsel %vm327_vm11, %v820_v22, %v844_v17 }
 0x456   : > { %994 = vmatmul.f32.gmra.mxu2 %v856_v23 }
 0x4ca   : > { %v969_v30 = vpop.f32.mrf.mxu1 }
 0x4cb   : > { %v970_v32 = vadd.f32 %v969_v30, %v947_v31  ;;  %v1015_v1 = vpop.f32.mrf.mxu3 }
 0x4d1   : > { %v992_v33 = vpop.f32.mrf.mxu2 }
 0x4d2   : > { %v993_v34 = vadd.f32 %v992_v33, %v970_v32  ;;  %v972_v37 = vpop.f32.mrf.mxu1 }
 0x4d3   : > { %v973_v41 = vadd.f32 %v972_v37, %v950_v38  ;;  %v1018_v44 = vpop.f32.mrf.mxu3  ;;  %v1150_v38 = vld [vmem:[#allocation6 + $0x6f0] sm:$0xff] }
 0x4d4   : > { %v1016_v36 = vadd.f32 %v1015_v1, %v993_v34  ;;  %1213 = vmatpush.msrb.mxu1 %v1150_v38  ;;  %v1540_v38 = vld [vmem:[#allocation8 + $0x3] ss:$0 sm:$0xff] }
 0x4d6   : > { %v1021_v39 = vmax.f32 %v1016_v36, 0.0 }
 0x4d8   : > { %v1025_v40 = vrot.slane %v1021_v39, 7  ;;  %v1180_v39 = vld [vmem:[#allocation6 + $0x7e0] sm:$0xff] }
 0x4d9   : > { %v995_v42 = vpop.f32.mrf.mxu2  ;;  %1261 = vmatpush.msrb.mxu3 %v1180_v39 }
 0x4da   : > { %v996_v43 = vadd.f32 %v995_v42, %v973_v41  ;;  %1028 = vrot.lane.b32.xlu0 %v1025_v40, %s1710_s18  ;;  %v1149_v41 = vld [vmem:[#allocation6 + $0x6e8] sm:$0xff]  ;;  %v1179_v42 = vld [vmem:[#allocation6 + $0x7d8] sm:$0xff] }
 0x4db   : > { %1214 = vmatpush.msrb.mxu1 %v1149_v41  ;;  %1262 = vmatpush.msrb.mxu3 %v1179_v42 }
 0x4dc   : > { %v1019_v45 = vadd.f32 %v1018_v44, %v996_v43  ;;  %v1165_v43 = vld [vmem:[#allocation6 + $0x768] sm:$0xff]  ;;  %v1148_v44 = vld [vmem:[#allocation6 + $0x6e0] sm:$0xff] }
 0x4dd   : > { %1215 = vmatpush.msrb.mxu1 %v1148_v44 }
 0x4de   : > { %v1022_v46 = vmax.f32 %v1019_v45, 0.0  ;;  %v1178_v45 = vld [vmem:[#allocation6 + $0x7d0] sm:$0xff] }
 0x4df   : > { %1263 = vmatpush.msrb.mxu3 %v1178_v45 }
 0x4e0   : > { %v1026_v48 = vrot.slane %v1022_v46, 7  ;;  %v1164_v46 = vld [vmem:[#allocation6 + $0x760] sm:$0xff] }
 0x4e2   : > { %1032 = vrot.lane.b32.xlu2 %v1026_v48, %s1710_s18  ;;  %v1027_v49 = vsel %vm236_vm1, %v1025_v40, %v1026_v48  ;;  %v1166_v40 = vld [vmem:[#allocation6 + $0x770] sm:$0xff]  ;;  %v1147_v48 = vld [vmem:[#allocation6 + $0x6d8] sm:$0xff] }
 0x4e3   : > { %1030 = vrot.lane.b32.xlu1 %v1027_v49, %s1710_s18  ;;  %1236 = vmatpush.msrb.mxu2 %v1166_v40  ;;  %v1177_v49 = vld [vmem:[#allocation6 + $0x7c8] sm:$0xff] }
 0x4e4   : > { %1216 = vmatpush.msrb.mxu1 %v1147_v48  ;;  %1264 = vmatpush.msrb.mxu3 %v1177_v49 }
 0x4e5   : > { %1237 = vmatpush.msrb.mxu2 %v1165_v43 }
 0x4e6   : > { %1217 = vmatpush.msrb.mxu1 %v1146_v52  ;;  %1265 = vmatpush.msrb.mxu3 %v1176_v53 }
 0x4e7   : > { %1238 = vmatpush.msrb.mxu2 %v1164_v46 }
 0x4e8   : > { %1218 = vmatpush.msrb.mxu1 %v1145_v55  ;;  %1266 = vmatpush.msrb.mxu3 %v1175_v56 }
 0x4e9   : > { %1239 = vmatpush.msrb.mxu2 %v1163_v50 }
 0x4ea   : > { %1219 = vmatpush.msrb.mxu1 %v1144_v58  ;;  %1267 = vmatpush.msrb.mxu3 %v1174_v59 }
 0x4eb   : > { %1240 = vmatpush.msrb.mxu2 %v1162_v54 }
 0x4ec   : > { %1220 = vmatpush.msrb.mxu1 %v1143_v61  ;;  %1268 = vmatpush.msrb.mxu3 %v1173_v62 }
 0x4ed   : > { %1241 = vmatpush.msrb.mxu2 %v1161_v57 }
 0x4ee   : > { %1269 = vmatpush.msrb.mxu3 %v1172_v2 }
 0x4ef   : > { %1242 = vmatpush.msrb.mxu2 %v1160_v60 }
 0x4f0   : > { %1270 = vmatpush.msrb.mxu3 %v1171_v5 }
 0x53c   : > { %v1033_v63 = vpop.permute.xlu2 %1032 }
 0x53d   : > { %1041 = vst.msk [vmem:[#allocation2 + $0x20] sm:$0x1] %vm257_vm5, %v1033_v63 }
 0x53e   : > { %1042 = vst.msk [vmem:[#allocation2 + $0x28] sm:$0x1] %vm259_vm6, %v1033_v63  ;;  %v1159_v63 = vld [vmem:[#allocation6 + $0x738] sm:$0xff] }
 0x53f   : > { %1243 = vmatpush.msrb.mxu2 %v1159_v63 }
 0x541   : > { %1244 = vmatpush.msrb.mxu2 %v1158_v3 }
 0x543   : > { %1245 = vmatpush.msrb.mxu2 %v1157_v6 }
 0x544   : > { %v1049_v26 = vld [vmem:[#allocation2 + $0x20] sm:$0x1] }
 0x545   : > { %v1050_v27 = vld [vmem:[#allocation2 + $0x28] sm:$0x1]  ;;  %v1053_v28 = vld [vmem:[#allocation2 + $0x20] sm:$0x3]  ;;  %v1067_v30 = vrot.slane %v1049_v26, 1 }
 0x546   : > { %v1054_v29 = vld [vmem:[#allocation2 + $0x28] sm:$0x3]  ;;  %v1069_v31 = vrot.slane %v1050_v27, 1  ;;  %v1095_v32 = vrot.slane %v1053_v28, 2 }
 0x547   : > { %v1097_v1 = vrot.slane %v1054_v29, 2 }
 0x54c   : > { %v1029_v0 = vpop.permute.xlu0 %1028 }
 0x54d   : > { %1037 = vst.msk [vmem:[#allocation2] sm:$0xfe] %vm249_vm3, %v1029_v0 }
 0x54e   : > { %1038 = vst.msk [vmem:[#allocation2 + $0x8] sm:$0xfe] %vm251_vm4, %v1029_v0  ;;  %v1142_v0 = vld [vmem:[#allocation6 + $0x6b0] sm:$0xff] }
 0x54f   : > { %1221 = vmatpush.msrb.mxu1 %v1142_v0 }
 0x551   : > { %1222 = vmatpush.msrb.mxu1 %v1141_v4 }
 0x554   : > { %v1043_v47 = vld [vmem:[#allocation2] sm:$0xff] }
 0x555   : > { %1205 = vmatmul.f32.vlgmr.msrb.gmra.mxu0 %v1043_v47  ;;  %v1031_v7 = vpop.permute.xlu1 %1030  ;;  %v1051_v8 = vld [vmem:[#allocation2] sm:$0xfc]  ;;  %v1052_v10 = vld [vmem:[#allocation2 + $0x8] sm:$0xfc]  ;;  %v1140_v47 = vld [vmem:[#allocation6 + $0x6a0] sm:$0xff] }
 0x556   : > { %1039 = vst.msk [vmem:[#allocation2 + $0x10] sm:$0xff] %vm253_vm7, %v1031_v7  ;;  %v1047_v9 = vld [vmem:[#allocation2] sm:$0xfe]  ;;  %v1048_v11 = vld [vmem:[#allocation2 + $0x8] sm:$0xfe]  ;;  %v1089_v16 = vrot.slane %v1051_v8, 2  ;;  %1223 = vmatpush.msrb.mxu1 %v1140_v47 }
 0x557   : > { %1040 = vst.msk [vmem:[#allocation2 + $0x18] sm:$0xff] %vm255_vm8, %v1031_v7  ;;  %v1061_v17 = vrot.slane %v1047_v9, 1  ;;  %v1092_v18 = vrot.slane %v1052_v10, 2  ;;  %v1064_v51 = vrot.slane %v1048_v11, 1  ;;  %v1170_v7 = vld [vmem:[#allocation6 + $0x790] sm:$0xff]  ;;  %v1156_v8 = vld [vmem:[#allocation6 + $0x720] sm:$0xff] }
 0x558   : > { %1271 = vmatpush.msrb.mxu3 %v1170_v7  ;;  %1246 = vmatpush.msrb.mxu2 %v1156_v8  ;;  %v1139_v9 = vld [vmem:[#allocation6 + $0x698] sm:$0xff]  ;;  %v1169_v10 = vld [vmem:[#allocation6 + $0x788] sm:$0xff] }
 0x559   : > { %1224 = vmatpush.msrb.mxu1 %v1139_v9  ;;  %v1155_v11 = vld [vmem:[#allocation6 + $0x718] sm:$0xff] }
 0x55a   : > { %1272 = vmatpush.msrb.mxu3 %v1169_v10  ;;  %1247 = vmatpush.msrb.mxu2 %v1155_v11 }
 0x55d   : > { %v1045_v12 = vld [vmem:[#allocation2 + $0x10] sm:$0xff] }
 0x55e   : > { %v1062_v13 = vrot.slane %v1045_v12, 1  ;;  %v1090_v14 = vrot.slane %v1045_v12, 2  ;;  %1208 = vmatmul.f32.gmra.mxu0 %v1045_v12  ;;  %v1979_v15 = vld [vmem:[#allocation2 + $0x18] sm:$0xff]  ;;  %v1138_v12 = vld [vmem:[#allocation6 + $0x690] sm:$0xff] }
 0x55f   : > { %v1093_v19 = vrot.slane %v1979_v15, 2  ;;  %v1065_v20 = vrot.slane %v1979_v15, 1  ;;  %1225 = vmatpush.msrb.mxu1 %v1138_v12 }
 0x560   : > { %v1091_v21 = vsel %vm308_vm9, %v1089_v16, %v1090_v14  ;;  %v1063_v22 = vsel %vm279_vm10, %v1061_v17, %v1062_v13  ;;  %v1068_v33 = vsel %vm279_vm10, %v1062_v13, %v1067_v30  ;;  %v1096_v35 = vsel %vm308_vm9, %v1090_v14, %v1095_v32  ;;  %v1168_v13 = vld [vmem:[#allocation6 + $0x780] sm:$0xff]  ;;  %v1154_v14 = vld [vmem:[#allocation6 + $0x710] sm:$0xff]  ;;  %v1137_v16 = vld [vmem:[#allocation6 + $0x688] sm:$0xff] }
 0x561   : > { %v1094_v23 = vsel %vm308_vm9, %v1092_v18, %v1093_v19  ;;  %1099 = vrot.lane.b32.xlu1 %v1091_v21, %s1711_s23  ;;  %v1066_v24 = vsel %vm279_vm10, %v1064_v51, %v1065_v20  ;;  %v1070_v34 = vsel %vm279_vm10, %v1065_v20, %v1069_v31  ;;  %v1098_v36 = vsel %vm308_vm9, %v1093_v19, %v1097_v1  ;;  %v1153_v17 = vld [vmem:[#allocation6 + $0x708] sm:$0xff]  ;;  %v1136_v18 = vld [vmem:[#allocation6 + $0x680] sm:$0xff] }
 0x562   : > { %1101 = vrot.lane.b32.xlu2 %v1094_v23, %s1711_s23  ;;  %v1527_v25 = vpack.i.bf16 %v1066_v24, %v1063_v22  ;;  %v1532_v37 = vpack.i.bf16 %v1070_v34, %v1068_v33  ;;  %1273 = vmatpush.msrb.mxu3 %v1168_v13  ;;  %v1152_v19 = vld [vmem:[#allocation6 + $0x700] sm:$0xff] }
 0x563   : > { %1248 = vmatpush.msrb.mxu2 %v1154_v14  ;;  %1226 = vmatpush.msrb.mxu1 %v1137_v16 }
 0x564   : > { %1528 = vrot.lane.b32.xlu0 %v1527_v25, %s1712_s29  ;;  %v1044_v25 = vld [vmem:[#allocation2 + $0x8] sm:$0xff] }
 0x565   : > { %1249 = vmatpush.msrb.mxu2 %v1153_v17  ;;  %1227 = vmatpush.msrb.mxu1 %v1136_v18 }
 0x567   : > { %1250 = vmatpush.msrb.mxu2 %v1152_v19 }
 0x569   : > { %1103 = vrot.lane.b32.xlu1 %v1096_v35, %s1711_s23 }
 0x56a   : > { %1105 = vrot.lane.b32.xlu2 %v1098_v36, %s1711_s23 }
 0x56c   : > { %1533 = vrot.lane.b32.xlu0 %v1532_v37, %s1712_s29 }
 0x5bc   : > { %v1102_v51 = vpop.permute.xlu2 %1101 }
 0x5c4   : > { %v1106_v29 = vpop.permute.xlu2 %1105 }
 0x5d2   : > { %v1206_v37 = vpop.f32.mrf.mxu0 }
 0x5d3   : > { %v1100_v20 = vpop.permute.xlu1 %1099  ;;  %v1207_v40 = vadd.f32 %v1540_v38, %v1206_v37 }
 0x5d4   : > { %v1107_v21 = vsel %vm327_vm11, %v1100_v20, %v1102_v51 }
 0x5d5   : > { %1412 = vmatmul.msk.f32.vlgmr.msrb.gmra.mxu3 %vm338_vm12, %v1107_v21 }
 0x5d6   : > { %v1529_v22 = vpop.permute.xlu0 %1528 }
 0x5d7   : > { %v1531_v23 = vunpack.i.h.bf16 %v1529_v22  ;;  %v1530_v24 = vunpack.i.l.bf16 %v1529_v22 }
 0x5d9   : > { %v1113_v26 = vsel %vm225_vm0, %v1044_v25, %v1530_v24  ;;  %v1079_v27 = vsel %vm225_vm0, %v1530_v24, %v1531_v23 }
 0x5da   : > { %1228 = vmatmul.f32.vlgmr.msrb.gmra.mxu1 %v1113_v26  ;;  %v1115_v28 = vsel %vm327_vm11, %v1079_v27, %v1100_v20 }
 0x5db   : > { %1251 = vmatmul.f32.vlgmr.msrb.gmra.mxu2 %v1115_v28  ;;  %v1104_v30 = vpop.permute.xlu1 %1103  ;;  %v1209_v45 = vpop.f32.mrf.mxu0 }
 0x5dc   : > { %v1108_v31 = vsel %vm327_vm11, %v1104_v30, %v1106_v29 }
 0x5dd   : > { %1413 = vmatmul.msk.f32.gmra.mxu3 %vm338_vm12, %v1108_v31 }
 0x5de   : > { %v1534_v32 = vpop.permute.xlu0 %1533 }
 0x5df   : > { %v1536_v1 = vunpack.i.h.bf16 %v1534_v32  ;;  %v1535_v33 = vunpack.i.l.bf16 %v1534_v32 }
 0x5e1   : > { %v1114_v34 = vsel %vm225_vm0, %v1979_v15, %v1535_v33  ;;  %v1080_v35 = vsel %vm225_vm0, %v1535_v33, %v1536_v1  ;;  %v1210_v15 = vadd.f32 %v1540_v38, %v1209_v45 }
 0x5e2   : > { %1231 = vmatmul.f32.gmra.mxu1 %v1114_v34  ;;  %v1116_v36 = vsel %vm327_vm11, %v1080_v35, %v1104_v30 }
 0x5e3   : > { %1254 = vmatmul.f32.gmra.mxu2 %v1116_v36 }
 0x657   : > { %v1229_v39 = vpop.f32.mrf.mxu1 }
 0x658   : > { %v1230_v41 = vadd.f32 %v1229_v39, %v1207_v40  ;;  %v1275_v42 = vpop.f32.mrf.mxu3 }
 0x65e   : > { %v1252_v43 = vpop.f32.mrf.mxu2 }
 0x65f   : > { %v1253_v44 = vadd.f32 %v1252_v43, %v1230_v41  ;;  %v1232_v48 = vpop.f32.mrf.mxu1 }
 0x660   : > { %v1233_v50 = vadd.f32 %v1232_v48, %v1210_v15  ;;  %v1278_v54 = vpop.f32.mrf.mxu3 }
 0x661   : > { %v1276_v46 = vadd.f32 %v1275_v42, %v1253_v44 }
 0x663   : > { %v1281_v49 = vmax.f32 %v1276_v46, 0.0 }
 0x665   : > { %1283 = vst [vmem:[%s223_s28] sm:$0xff] %v1281_v49 }
 0x666   : > { %v1255_v52 = vpop.f32.mrf.mxu2 }
 0x667   : > { %v1256_v53 = vadd.f32 %v1255_v52, %v1233_v50 }
 0x669   : > { %v1279_v55 = vadd.f32 %v1278_v54, %v1256_v53 }
 0x66b   : > { %v1282_v56 = vmax.f32 %v1279_v55, 0.0 }
 0x66d   : > { %1284 = vst [vmem:[%s223_s28 + $0x8] sm:$0xff] %v1282_v56 }
 0x66e   : > { %1658 = shalt.err (!%p1655_p10)
}
 0x66f   : > { %s1713_s20 = smov 128  }
 0x670   : > { %1431 = dma.vmem_to_hbm [thread:$0]  (%p1806_p5), %s1299_s9, 256, %s1301_s10, %s1286_s16, %s1713_s20, %s1713_s20, %s1710_s18  }
 0x671 PF: > { %s1315_s23 = sand.u32 1, %s1689_s12   ;;  %p2053_p12 = scmp.ge.s32.totalorder %s1701_s15, 2 }
 0x672   : > { %s1316_s29 = scalar_lea.sflag [#allocation5], %s1315_s23 }
 0x673   : > { %p1445_p13 = pnand %p2053_p12, %p1769_p6 }
 0x675   : > { %p1446_p0 = pneg %p1445_p13 }
 0x677   : > { %1684 = dma.done.wait (%p1446_p0), %s1316_s29, 256  }
 0x678   : > { %1686 = vsyncadd (%p1446_p0), %s1316_s29, 4294967040  ;;  %p17_p3 = scmp.ge.s32.totalorder %s1793_s8, 4   ;;  %s2054_s12 = smov %s1693_s13 }
 0x679   : > { %s2055_s13 = smov %s1697_s14  ;;  %s2056_s14 = smov %s1802_s11 }
 0x67a   : > { %s2057_s15 = smov %s1793_s8  ;;  %19 = sbr.rel (!%p17_p3) target bundleno = 6 (0x6), region = 91 }
 0x67f   :  { %1322 = vsyncpa [#allocation4], 1 }
 0x680   :  { %1324 = vsyncpa [#allocation4 + $0x1], 1 }
 0x681   :  { %1325 = vsyncpa [#allocation7], 1 }
 0x682   :  { %1326 = vsyncpa [#allocation5], 1 }
 0x683   :  { %1328 = vsyncpa [#allocation5 + $0x1], 1 }

</bundles_post_ra>
